<compile_context>
chip_gen: v5e
topology: v5e:2x2
jax: 0.10.0
libtpu: 0.0.40
codegen_flags: <defaults>
</compile_context>

<pallas_src>
import functools

import jax
import jax.numpy as jnp
from jax.experimental import pallas as pl
from jax.experimental.pallas import tpu as pltpu

# ---------------------------------------------------------------------------
# Packed-parameter slab layout (all rows are 3*GP = 384 lanes wide, f32).
# Row offsets are multiples of 8 -> every in-kernel slice is sublane-aligned.
# ---------------------------------------------------------------------------
GP = 128                      # lanes per GRU gate block (>= hidden size H)
D_IN = 16                     # GRU input feature size (4 streams x 4 features)
ROW_WIH = 0                   # (D_IN, 3GP) input->hidden weights, gate order r|z|n
ROW_WHH = ROW_WIH + D_IN      # (GP,   3GP) hidden->hidden weights (row zero-padded)
ROW_BIAS = ROW_WHH + GP       # (8,    3GP) row0: b_ih (+ b_hh for r,z); row1: b_hn
                              #             row2: mlp b1; row3: mlp b2
ROW_W1 = ROW_BIAS + 8         # (GP,   3GP) mlp W1^T in [:H, :H]
ROW_W2 = ROW_W1 + GP          # (GP,   3GP) mlp W2^T in [:H, :2]
SLAB_ROWS = ROW_W2 + GP       # 408 rows (multiple of 8), ~612 KiB f32


# ----------------------------------------------------------------------------
# Pallas kernel: full GRU recurrence over T steps + MLP head, single grid step.
# Everything lives in VMEM (block == full array); no scratch buffers.
# ----------------------------------------------------------------------------
def goal_predictor_kernel(x_ref, slab_ref, out_ref, *, T, B, BP):
    # ---- one-time, loop-invariant loads ----
    wih = slab_ref[ROW_WIH:ROW_WIH + D_IN, :]             # (16, 3GP)
    whh = slab_ref[ROW_WHH:ROW_WHH + GP, :]               # (GP, 3GP)
    bias = slab_ref[ROW_BIAS:ROW_BIAS + 8, :]             # (8, 3GP)
    b0 = bias[0:1, :]                                     # folded gate biases
    b_hn = jnp.broadcast_to(bias[1:2, 2 * GP:3 * GP], (BP, GP))   # hoisted bcast

    # ---- hoisted input projection: ONE MXU matmul over all T*BP rows,
    #      kept in-register (no scratch round trip) ----
    gi = jnp.dot(x_ref[...], wih, preferred_element_type=jnp.float32) + b0

    # ---- fully unrolled GRU recurrence; h is vreg-resident, (BP, GP) padded.
    #      Padded lanes/rows stay exactly zero / are ignored at the end. ----
    h = jnp.zeros((BP, GP), jnp.float32)
    for t in range(T):                                    # T static -> unrolled
        gi_t = gi[t * BP:(t + 1) * BP, :]                 # static, sublane-aligned
        gh = jnp.dot(h, whh, preferred_element_type=jnp.float32)     # (BP, 3GP)
        r = jax.nn.sigmoid(gi_t[:, 0:GP] + gh[:, 0:GP])              # whole-vreg
        z = jax.nn.sigmoid(gi_t[:, GP:2 * GP] + gh[:, GP:2 * GP])
        n = jnp.tanh(gi_t[:, 2 * GP:3 * GP] + r * (gh[:, 2 * GP:3 * GP] + b_hn))
        h = (1.0 - z) * n + z * h

    # ---- MLP head: Linear -> ReLU -> Linear -> Sigmoid ----
    w1 = slab_ref[ROW_W1:ROW_W1 + GP, 0:GP]               # (GP, GP)
    w2 = slab_ref[ROW_W2:ROW_W2 + GP, 0:GP]               # (GP, GP), cols 2: zero
    b1 = bias[2:3, 0:GP]
    b2 = bias[3:4, 0:2]
    y1 = jnp.maximum(jnp.dot(h, w1, preferred_element_type=jnp.float32) + b1, 0.0)
    y2 = jnp.dot(y1, w2, preferred_element_type=jnp.float32)         # (BP, GP)
    # TODO(synk): at real batch sizes emit a lane-dense output (e.g. (2, B) or a
    # padded slab) instead of a (B, 2) masked store; negligible at B=2.
    out_ref[...] = jax.nn.sigmoid(y2[0:B, 0:2] + b2)


# ----------------------------------------------------------------------------
# One-time parameter packing (run at init, NOT per forward call).
# ----------------------------------------------------------------------------
def pack_params(p):
    H = p["w_hh"].shape[1]
    assert H <= GP, "hidden size must fit in one 128-lane gate block"
    assert p["w_ih"].shape[1] == D_IN
    slab = jnp.zeros((SLAB_ROWS, 3 * GP), jnp.float32)
    for g in range(3):                                   # PyTorch gate order r|z|n
        slab = slab.at[ROW_WIH:ROW_WIH + D_IN, g * GP:g * GP + H].set(
            p["w_ih"][g * H:(g + 1) * H, :].T)
        slab = slab.at[ROW_WHH:ROW_WHH + H, g * GP:g * GP + H].set(
            p["w_hh"][g * H:(g + 1) * H, :].T)
    b_ih, b_hh = p["b_ih"], p["b_hh"]
    # Fold b_hr / b_hz into the hoisted projection; keep b_hn separate because
    # it must stay inside r * (h_n + b_hn).
    slab = slab.at[ROW_BIAS, 0 * GP:0 * GP + H].set(b_ih[0:H] + b_hh[0:H])
    slab = slab.at[ROW_BIAS, 1 * GP:1 * GP + H].set(b_ih[H:2 * H] + b_hh[H:2 * H])
    slab = slab.at[ROW_BIAS, 2 * GP:2 * GP + H].set(b_ih[2 * H:3 * H])
    slab = slab.at[ROW_BIAS + 1, 2 * GP:2 * GP + H].set(b_hh[2 * H:3 * H])
    slab = slab.at[ROW_BIAS + 2, 0:H].set(p["b1"])
    slab = slab.at[ROW_BIAS + 3, 0:2].set(p["b2"])
    slab = slab.at[ROW_W1:ROW_W1 + H, 0:H].set(p["w1"].T)
    slab = slab.at[ROW_W2:ROW_W2 + H, 0:2].set(p["w2"].T)
    return slab


def _full_spec(shape):
    zeros = (0,) * len(shape)
    return pl.BlockSpec(shape, lambda i, _z=zeros: _z)


@jax.jit
def goal_predictor_forward(lcv, fv, nlv, olv, slab):
    """Concat the 4 input streams and run the fused GRU+MLP Pallas kernel."""
    x = jnp.concatenate([lcv, fv, nlv, olv], axis=-1)        # (B, T, 16)
    B, T, D = x.shape
    BP = ((B + 7) // 8) * 8                                  # sublane-pad batch
    # time-major, batch padded to a sublane multiple: row = t*BP + b
    x_tm = jnp.transpose(x, (1, 0, 2)).astype(jnp.float32)   # (T, B, 16)
    x_flat = jnp.pad(x_tm, ((0, 0), (0, BP - B), (0, 0))).reshape(T * BP, D)

    kernel = functools.partial(goal_predictor_kernel, T=T, B=B, BP=BP)
    grid_spec = pltpu.PrefetchScalarGridSpec(
        num_scalar_prefetch=0,
        grid=(1,),
        in_specs=[_full_spec(x_flat.shape), _full_spec(slab.shape)],
        out_specs=_full_spec((B, 2)),
    )
    # TODO(synk): for production batch sizes add a leading 'parallel' batch grid
    # axis (B tiles of 128 on v5e / 256 on v6e/v7x), cast x + slab to bf16 on
    # v6e/v7x (keep elementwise f32 on v5e), and size blocks against v7x's
    # smaller 64 MiB physical / 32 MiB scoped VMEM.
    return pl.pallas_call(
        kernel,
        out_shape=jax.ShapeDtypeStruct((B, 2), jnp.float32),
        grid_spec=grid_spec,
        compiler_params=pltpu.CompilerParams(
            dimension_semantics=("arbitrary",)),
    )(x_flat, slab)


# ----------------------------------------------------------------------------
# Pure-JAX reference (mirrors torch.nn.GRU + nn.Sequential semantics exactly)
# ----------------------------------------------------------------------------
def reference_forward(lcv, fv, nlv, olv, p):
    x = jnp.concatenate([lcv, fv, nlv, olv], axis=-1)          # (B, T, 16)
    B, T, _ = x.shape
    H = p["w_hh"].shape[1]
    h = jnp.zeros((B, H), jnp.float32)
    for t in range(T):
        xt = x[:, t, :]
        gi = xt @ p["w_ih"].T + p["b_ih"]
        gh = h @ p["w_hh"].T + p["b_hh"]
        i_r, i_z, i_n = jnp.split(gi, 3, axis=-1)
        h_r, h_z, h_n = jnp.split(gh, 3, axis=-1)
        r = jax.nn.sigmoid(i_r + h_r)
        z = jax.nn.sigmoid(i_z + h_z)
        n = jnp.tanh(i_n + r * h_n)
        h = (1.0 - z) * n + z * h
    y = jnp.maximum(h @ p["w1"].T + p["b1"], 0.0)
    return jax.nn.sigmoid(y @ p["w2"].T + p["b2"])


def init_params(key, context_dim, input_size=16):
    """Deterministic synthetic params with the shapes nn.GRU / nn.Linear create."""
    H = context_dim
    ks = jax.random.split(key, 8)
    s = 1.0 / jnp.sqrt(H)
    u = lambda k, shape: jax.random.uniform(k, shape, jnp.float32, -s, s)
    return {
        # lcv_gru (fv_gru is unused in forward, so not materialized)
        "w_ih": u(ks[0], (3 * H, input_size)),
        "w_hh": u(ks[1], (3 * H, H)),
        "b_ih": u(ks[2], (3 * H,)),
        "b_hh": u(ks[3], (3 * H,)),
        # mlp
        "w1": u(ks[4], (H, H)),
        "b1": u(ks[5], (H,)),
        "w2": u(ks[6], (2, H)),
        "b2": u(ks[7], (2,)),
    }


if __name__ == "__main__":
    B, T, H = 2, 8, 32            # batch, seq len, context_dim
    key = jax.random.PRNGKey(0)
    k_lcv, k_fv, k_nlv, k_olv, k_p = jax.random.split(key, 5)

    # Each stream contributes 4 features; concat gives the GRU's input_size=16.
    lcv = jax.random.normal(k_lcv, (B, T, 4), jnp.float32)
    fv = jax.random.normal(k_fv, (B, T, 4), jnp.float32)
    nlv = jax.random.normal(k_nlv, (B, T, 4), jnp.float32)
    olv = jax.random.normal(k_olv, (B, T, 4), jnp.float32)

    params = init_params(k_p, H, input_size=16)
    slab = jax.block_until_ready(pack_params(params))   # packed ONCE at init

    pred = goal_predictor_forward(lcv, fv, nlv, olv, slab)
    pred = jax.block_until_ready(pred)

    ref = reference_forward(lcv, fv, nlv, olv, params)
    assert pred.shape == (B, 2)
    assert jnp.allclose(pred, ref, atol=1e-5, rtol=1e-5), (pred, ref)

    print("KERNEL_OK")
</pallas_src>

<mosaic_0001>
module attributes {stable_mosaic.version = 11 : i64} {
  func.func @goal_predictor_kernel(%arg0: i32, %arg1: memref<64x16xf32, #tpu.memory_space<vmem>>, %arg2: memref<408x384xf32, #tpu.memory_space<vmem>>, %arg3: memref<2x2xf32, #tpu.memory_space<vmem>>) attributes {dimension_semantics = [#tpu.dimension_semantics<arbitrary>], iteration_bounds = array<i64: 1>, scalar_prefetch = 0 : i64, scratch_operands = 0 : i64, tpu.core_type = #tpu.core_type<tc>, window_params = [{pipeline_mode = #tpu.pipeline_mode<synchronous>, transform_indices = @transform_0, window_bounds = array<i64: 64, 16>}, {pipeline_mode = #tpu.pipeline_mode<synchronous>, transform_indices = @transform_1, window_bounds = array<i64: 408, 384>}, {pipeline_mode = #tpu.pipeline_mode<synchronous>, transform_indices = @transform_2, window_bounds = array<i64: 2, 2>}]} {
    %c0 = arith.constant 0 : index
    %c0_0 = arith.constant 0 : index
    %0 = vector.load %arg2[%c0, %c0_0] : memref<408x384xf32, #tpu.memory_space<vmem>>, vector<16x384xf32>
    %c16 = arith.constant 16 : index
    %c0_1 = arith.constant 0 : index
    %1 = vector.load %arg2[%c16, %c0_1] : memref<408x384xf32, #tpu.memory_space<vmem>>, vector<128x384xf32>
    %c144 = arith.constant 144 : index
    %c0_2 = arith.constant 0 : index
    %2 = vector.load %arg2[%c144, %c0_2] : memref<408x384xf32, #tpu.memory_space<vmem>>, vector<8x384xf32>
    %3 = vector.extract_strided_slice %2 {offsets = [0, 0], sizes = [1, 384], strides = [1, 1]} : vector<8x384xf32> to vector<1x384xf32>
    %4 = vector.extract_strided_slice %2 {offsets = [1, 256], sizes = [1, 128], strides = [1, 1]} : vector<8x384xf32> to vector<1x128xf32>
    %5 = vector.shape_cast %4 : vector<1x128xf32> to vector<1x128xf32>
    %6 = vector.broadcast %5 : vector<1x128xf32> to vector<8x128xf32>
    %c0_3 = arith.constant 0 : index
    %c0_4 = arith.constant 0 : index
    %7 = vector.load %arg1[%c0_3, %c0_4] : memref<64x16xf32, #tpu.memory_space<vmem>>, vector<64x16xf32>
    %cst = arith.constant dense<0.000000e+00> : vector<64x384xf32>
    %8 = tpu.matmul %7, %0, %cst {dimension_numbers = #tpu.dot_dimension_numbers<[1], [0], [0], [1], [0, 0, 1, 1], [], []>} : vector<64x16xf32>, vector<16x384xf32>, vector<64x384xf32> -> vector<64x384xf32>
    %9 = vector.broadcast %3 : vector<1x384xf32> to vector<64x384xf32>
    %10 = arith.addf %8, %9 : vector<64x384xf32>
    %cst_5 = arith.constant 0.000000e+00 : f32
    %11 = vector.broadcast %cst_5 : f32 to vector<8x128xf32>
    %12 = vector.extract_strided_slice %10 {offsets = [0, 0], sizes = [8, 384], strides = [1, 1]} : vector<64x384xf32> to vector<8x384xf32>
    %cst_6 = arith.constant dense<0.000000e+00> : vector<8x384xf32>
    %13 = tpu.matmul %11, %1, %cst_6 {dimension_numbers = #tpu.dot_dimension_numbers<[1], [0], [0], [1], [0, 0, 1, 1], [], []>} : vector<8x128xf32>, vector<128x384xf32>, vector<8x384xf32> -> vector<8x384xf32>
    %14 = vector.extract_strided_slice %12 {offsets = [0, 0], sizes = [8, 128], strides = [1, 1]} : vector<8x384xf32> to vector<8x128xf32>
    %15 = vector.extract_strided_slice %13 {offsets = [0, 0], sizes = [8, 128], strides = [1, 1]} : vector<8x384xf32> to vector<8x128xf32>
    %16 = arith.addf %14, %15 : vector<8x128xf32>
    %17 = arith.negf %16 : vector<8x128xf32>
    %18 = math.exp %17 : vector<8x128xf32>
    %cst_7 = arith.constant 1.000000e+00 : f32
    %19 = vector.broadcast %cst_7 : f32 to vector<8x128xf32>
    %20 = arith.addf %19, %18 : vector<8x128xf32>
    %21 = arith.divf %19, %20 : vector<8x128xf32>
    %22 = vector.extract_strided_slice %12 {offsets = [0, 128], sizes = [8, 128], strides = [1, 1]} : vector<8x384xf32> to vector<8x128xf32>
    %23 = vector.extract_strided_slice %13 {offsets = [0, 128], sizes = [8, 128], strides = [1, 1]} : vector<8x384xf32> to vector<8x128xf32>
    %24 = arith.addf %22, %23 : vector<8x128xf32>
    %25 = arith.negf %24 : vector<8x128xf32>
    %26 = math.exp %25 : vector<8x128xf32>
    %cst_8 = arith.constant 1.000000e+00 : f32
    %27 = vector.broadcast %cst_8 : f32 to vector<8x128xf32>
    %28 = arith.addf %27, %26 : vector<8x128xf32>
    %29 = arith.divf %27, %28 : vector<8x128xf32>
    %30 = vector.extract_strided_slice %12 {offsets = [0, 256], sizes = [8, 128], strides = [1, 1]} : vector<8x384xf32> to vector<8x128xf32>
    %31 = vector.extract_strided_slice %13 {offsets = [0, 256], sizes = [8, 128], strides = [1, 1]} : vector<8x384xf32> to vector<8x128xf32>
    %32 = arith.addf %31, %6 : vector<8x128xf32>
    %33 = arith.mulf %21, %32 : vector<8x128xf32>
    %34 = arith.addf %30, %33 : vector<8x128xf32>
    %35 = math.tanh %34 : vector<8x128xf32>
    %cst_9 = arith.constant 1.000000e+00 : f32
    %36 = vector.broadcast %cst_9 : f32 to vector<8x128xf32>
    %37 = arith.subf %36, %29 : vector<8x128xf32>
    %38 = arith.mulf %37, %35 : vector<8x128xf32>
    %39 = arith.mulf %29, %11 : vector<8x128xf32>
    %40 = arith.addf %38, %39 : vector<8x128xf32>
    %41 = vector.extract_strided_slice %10 {offsets = [8, 0], sizes = [8, 384], strides = [1, 1]} : vector<64x384xf32> to vector<8x384xf32>
    %cst_10 = arith.constant dense<0.000000e+00> : vector<8x384xf32>
    %42 = tpu.matmul %40, %1, %cst_10 {dimension_numbers = #tpu.dot_dimension_numbers<[1], [0], [0], [1], [0, 0, 1, 1], [], []>} : vector<8x128xf32>, vector<128x384xf32>, vector<8x384xf32> -> vector<8x384xf32>
    %43 = vector.extract_strided_slice %41 {offsets = [0, 0], sizes = [8, 128], strides = [1, 1]} : vector<8x384xf32> to vector<8x128xf32>
    %44 = vector.extract_strided_slice %42 {offsets = [0, 0], sizes = [8, 128], strides = [1, 1]} : vector<8x384xf32> to vector<8x128xf32>
    %45 = arith.addf %43, %44 : vector<8x128xf32>
    %46 = arith.negf %45 : vector<8x128xf32>
    %47 = math.exp %46 : vector<8x128xf32>
    %cst_11 = arith.constant 1.000000e+00 : f32
    %48 = vector.broadcast %cst_11 : f32 to vector<8x128xf32>
    %49 = arith.addf %48, %47 : vector<8x128xf32>
    %50 = arith.divf %48, %49 : vector<8x128xf32>
    %51 = vector.extract_strided_slice %41 {offsets = [0, 128], sizes = [8, 128], strides = [1, 1]} : vector<8x384xf32> to vector<8x128xf32>
    %52 = vector.extract_strided_slice %42 {offsets = [0, 128], sizes = [8, 128], strides = [1, 1]} : vector<8x384xf32> to vector<8x128xf32>
    %53 = arith.addf %51, %52 : vector<8x128xf32>
    %54 = arith.negf %53 : vector<8x128xf32>
    %55 = math.exp %54 : vector<8x128xf32>
    %cst_12 = arith.constant 1.000000e+00 : f32
    %56 = vector.broadcast %cst_12 : f32 to vector<8x128xf32>
    %57 = arith.addf %56, %55 : vector<8x128xf32>
    %58 = arith.divf %56, %57 : vector<8x128xf32>
    %59 = vector.extract_strided_slice %41 {offsets = [0, 256], sizes = [8, 128], strides = [1, 1]} : vector<8x384xf32> to vector<8x128xf32>
    %60 = vector.extract_strided_slice %42 {offsets = [0, 256], sizes = [8, 128], strides = [1, 1]} : vector<8x384xf32> to vector<8x128xf32>
    %61 = arith.addf %60, %6 : vector<8x128xf32>
    %62 = arith.mulf %50, %61 : vector<8x128xf32>
    %63 = arith.addf %59, %62 : vector<8x128xf32>
    %64 = math.tanh %63 : vector<8x128xf32>
    %cst_13 = arith.constant 1.000000e+00 : f32
    %65 = vector.broadcast %cst_13 : f32 to vector<8x128xf32>
    %66 = arith.subf %65, %58 : vector<8x128xf32>
    %67 = arith.mulf %66, %64 : vector<8x128xf32>
    %68 = arith.mulf %58, %40 : vector<8x128xf32>
    %69 = arith.addf %67, %68 : vector<8x128xf32>
    %70 = vector.extract_strided_slice %10 {offsets = [16, 0], sizes = [8, 384], strides = [1, 1]} : vector<64x384xf32> to vector<8x384xf32>
    %cst_14 = arith.constant dense<0.000000e+00> : vector<8x384xf32>
    %71 = tpu.matmul %69, %1, %cst_14 {dimension_numbers = #tpu.dot_dimension_numbers<[1], [0], [0], [1], [0, 0, 1, 1], [], []>} : vector<8x128xf32>, vector<128x384xf32>, vector<8x384xf32> -> vector<8x384xf32>
    %72 = vector.extract_strided_slice %70 {offsets = [0, 0], sizes = [8, 128], strides = [1, 1]} : vector<8x384xf32> to vector<8x128xf32>
    %73 = vector.extract_strided_slice %71 {offsets = [0, 0], sizes = [8, 128], strides = [1, 1]} : vector<8x384xf32> to vector<8x128xf32>
    %74 = arith.addf %72, %73 : vector<8x128xf32>
    %75 = arith.negf %74 : vector<8x128xf32>
    %76 = math.exp %75 : vector<8x128xf32>
    %cst_15 = arith.constant 1.000000e+00 : f32
    %77 = vector.broadcast %cst_15 : f32 to vector<8x128xf32>
    %78 = arith.addf %77, %76 : vector<8x128xf32>
    %79 = arith.divf %77, %78 : vector<8x128xf32>
    %80 = vector.extract_strided_slice %70 {offsets = [0, 128], sizes = [8, 128], strides = [1, 1]} : vector<8x384xf32> to vector<8x128xf32>
    %81 = vector.extract_strided_slice %71 {offsets = [0, 128], sizes = [8, 128], strides = [1, 1]} : vector<8x384xf32> to vector<8x128xf32>
    %82 = arith.addf %80, %81 : vector<8x128xf32>
    %83 = arith.negf %82 : vector<8x128xf32>
    %84 = math.exp %83 : vector<8x128xf32>
    %cst_16 = arith.constant 1.000000e+00 : f32
    %85 = vector.broadcast %cst_16 : f32 to vector<8x128xf32>
    %86 = arith.addf %85, %84 : vector<8x128xf32>
    %87 = arith.divf %85, %86 : vector<8x128xf32>
    %88 = vector.extract_strided_slice %70 {offsets = [0, 256], sizes = [8, 128], strides = [1, 1]} : vector<8x384xf32> to vector<8x128xf32>
    %89 = vector.extract_strided_slice %71 {offsets = [0, 256], sizes = [8, 128], strides = [1, 1]} : vector<8x384xf32> to vector<8x128xf32>
    %90 = arith.addf %89, %6 : vector<8x128xf32>
    %91 = arith.mulf %79, %90 : vector<8x128xf32>
    %92 = arith.addf %88, %91 : vector<8x128xf32>
    %93 = math.tanh %92 : vector<8x128xf32>
    %cst_17 = arith.constant 1.000000e+00 : f32
    %94 = vector.broadcast %cst_17 : f32 to vector<8x128xf32>
    %95 = arith.subf %94, %87 : vector<8x128xf32>
    %96 = arith.mulf %95, %93 : vector<8x128xf32>
    %97 = arith.mulf %87, %69 : vector<8x128xf32>
    %98 = arith.addf %96, %97 : vector<8x128xf32>
    %99 = vector.extract_strided_slice %10 {offsets = [24, 0], sizes = [8, 384], strides = [1, 1]} : vector<64x384xf32> to vector<8x384xf32>
    %cst_18 = arith.constant dense<0.000000e+00> : vector<8x384xf32>
    %100 = tpu.matmul %98, %1, %cst_18 {dimension_numbers = #tpu.dot_dimension_numbers<[1], [0], [0], [1], [0, 0, 1, 1], [], []>} : vector<8x128xf32>, vector<128x384xf32>, vector<8x384xf32> -> vector<8x384xf32>
    %101 = vector.extract_strided_slice %99 {offsets = [0, 0], sizes = [8, 128], strides = [1, 1]} : vector<8x384xf32> to vector<8x128xf32>
    %102 = vector.extract_strided_slice %100 {offsets = [0, 0], sizes = [8, 128], strides = [1, 1]} : vector<8x384xf32> to vector<8x128xf32>
    %103 = arith.addf %101, %102 : vector<8x128xf32>
    %104 = arith.negf %103 : vector<8x128xf32>
    %105 = math.exp %104 : vector<8x128xf32>
    %cst_19 = arith.constant 1.000000e+00 : f32
    %106 = vector.broadcast %cst_19 : f32 to vector<8x128xf32>
    %107 = arith.addf %106, %105 : vector<8x128xf32>
    %108 = arith.divf %106, %107 : vector<8x128xf32>
    %109 = vector.extract_strided_slice %99 {offsets = [0, 128], sizes = [8, 128], strides = [1, 1]} : vector<8x384xf32> to vector<8x128xf32>
    %110 = vector.extract_strided_slice %100 {offsets = [0, 128], sizes = [8, 128], strides = [1, 1]} : vector<8x384xf32> to vector<8x128xf32>
    %111 = arith.addf %109, %110 : vector<8x128xf32>
    %112 = arith.negf %111 : vector<8x128xf32>
    %113 = math.exp %112 : vector<8x128xf32>
    %cst_20 = arith.constant 1.000000e+00 : f32
    %114 = vector.broadcast %cst_20 : f32 to vector<8x128xf32>
    %115 = arith.addf %114, %113 : vector<8x128xf32>
    %116 = arith.divf %114, %115 : vector<8x128xf32>
    %117 = vector.extract_strided_slice %99 {offsets = [0, 256], sizes = [8, 128], strides = [1, 1]} : vector<8x384xf32> to vector<8x128xf32>
    %118 = vector.extract_strided_slice %100 {offsets = [0, 256], sizes = [8, 128], strides = [1, 1]} : vector<8x384xf32> to vector<8x128xf32>
    %119 = arith.addf %118, %6 : vector<8x128xf32>
    %120 = arith.mulf %108, %119 : vector<8x128xf32>
    %121 = arith.addf %117, %120 : vector<8x128xf32>
    %122 = math.tanh %121 : vector<8x128xf32>
    %cst_21 = arith.constant 1.000000e+00 : f32
    %123 = vector.broadcast %cst_21 : f32 to vector<8x128xf32>
    %124 = arith.subf %123, %116 : vector<8x128xf32>
    %125 = arith.mulf %124, %122 : vector<8x128xf32>
    %126 = arith.mulf %116, %98 : vector<8x128xf32>
    %127 = arith.addf %125, %126 : vector<8x128xf32>
    %128 = vector.extract_strided_slice %10 {offsets = [32, 0], sizes = [8, 384], strides = [1, 1]} : vector<64x384xf32> to vector<8x384xf32>
    %cst_22 = arith.constant dense<0.000000e+00> : vector<8x384xf32>
    %129 = tpu.matmul %127, %1, %cst_22 {dimension_numbers = #tpu.dot_dimension_numbers<[1], [0], [0], [1], [0, 0, 1, 1], [], []>} : vector<8x128xf32>, vector<128x384xf32>, vector<8x384xf32> -> vector<8x384xf32>
    %130 = vector.extract_strided_slice %128 {offsets = [0, 0], sizes = [8, 128], strides = [1, 1]} : vector<8x384xf32> to vector<8x128xf32>
    %131 = vector.extract_strided_slice %129 {offsets = [0, 0], sizes = [8, 128], strides = [1, 1]} : vector<8x384xf32> to vector<8x128xf32>
    %132 = arith.addf %130, %131 : vector<8x128xf32>
    %133 = arith.negf %132 : vector<8x128xf32>
    %134 = math.exp %133 : vector<8x128xf32>
    %cst_23 = arith.constant 1.000000e+00 : f32
    %135 = vector.broadcast %cst_23 : f32 to vector<8x128xf32>
    %136 = arith.addf %135, %134 : vector<8x128xf32>
    %137 = arith.divf %135, %136 : vector<8x128xf32>
    %138 = vector.extract_strided_slice %128 {offsets = [0, 128], sizes = [8, 128], strides = [1, 1]} : vector<8x384xf32> to vector<8x128xf32>
    %139 = vector.extract_strided_slice %129 {offsets = [0, 128], sizes = [8, 128], strides = [1, 1]} : vector<8x384xf32> to vector<8x128xf32>
    %140 = arith.addf %138, %139 : vector<8x128xf32>
    %141 = arith.negf %140 : vector<8x128xf32>
    %142 = math.exp %141 : vector<8x128xf32>
    %cst_24 = arith.constant 1.000000e+00 : f32
    %143 = vector.broadcast %cst_24 : f32 to vector<8x128xf32>
    %144 = arith.addf %143, %142 : vector<8x128xf32>
    %145 = arith.divf %143, %144 : vector<8x128xf32>
    %146 = vector.extract_strided_slice %128 {offsets = [0, 256], sizes = [8, 128], strides = [1, 1]} : vector<8x384xf32> to vector<8x128xf32>
    %147 = vector.extract_strided_slice %129 {offsets = [0, 256], sizes = [8, 128], strides = [1, 1]} : vector<8x384xf32> to vector<8x128xf32>
    %148 = arith.addf %147, %6 : vector<8x128xf32>
    %149 = arith.mulf %137, %148 : vector<8x128xf32>
    %150 = arith.addf %146, %149 : vector<8x128xf32>
    %151 = math.tanh %150 : vector<8x128xf32>
    %cst_25 = arith.constant 1.000000e+00 : f32
    %152 = vector.broadcast %cst_25 : f32 to vector<8x128xf32>
    %153 = arith.subf %152, %145 : vector<8x128xf32>
    %154 = arith.mulf %153, %151 : vector<8x128xf32>
    %155 = arith.mulf %145, %127 : vector<8x128xf32>
    %156 = arith.addf %154, %155 : vector<8x128xf32>
    %157 = vector.extract_strided_slice %10 {offsets = [40, 0], sizes = [8, 384], strides = [1, 1]} : vector<64x384xf32> to vector<8x384xf32>
    %cst_26 = arith.constant dense<0.000000e+00> : vector<8x384xf32>
    %158 = tpu.matmul %156, %1, %cst_26 {dimension_numbers = #tpu.dot_dimension_numbers<[1], [0], [0], [1], [0, 0, 1, 1], [], []>} : vector<8x128xf32>, vector<128x384xf32>, vector<8x384xf32> -> vector<8x384xf32>
    %159 = vector.extract_strided_slice %157 {offsets = [0, 0], sizes = [8, 128], strides = [1, 1]} : vector<8x384xf32> to vector<8x128xf32>
    %160 = vector.extract_strided_slice %158 {offsets = [0, 0], sizes = [8, 128], strides = [1, 1]} : vector<8x384xf32> to vector<8x128xf32>
    %161 = arith.addf %159, %160 : vector<8x128xf32>
    %162 = arith.negf %161 : vector<8x128xf32>
    %163 = math.exp %162 : vector<8x128xf32>
    %cst_27 = arith.constant 1.000000e+00 : f32
    %164 = vector.broadcast %cst_27 : f32 to vector<8x128xf32>
    %165 = arith.addf %164, %163 : vector<8x128xf32>
    %166 = arith.divf %164, %165 : vector<8x128xf32>
    %167 = vector.extract_strided_slice %157 {offsets = [0, 128], sizes = [8, 128], strides = [1, 1]} : vector<8x384xf32> to vector<8x128xf32>
    %168 = vector.extract_strided_slice %158 {offsets = [0, 128], sizes = [8, 128], strides = [1, 1]} : vector<8x384xf32> to vector<8x128xf32>
    %169 = arith.addf %167, %168 : vector<8x128xf32>
    %170 = arith.negf %169 : vector<8x128xf32>
    %171 = math.exp %170 : vector<8x128xf32>
    %cst_28 = arith.constant 1.000000e+00 : f32
    %172 = vector.broadcast %cst_28 : f32 to vector<8x128xf32>
    %173 = arith.addf %172, %171 : vector<8x128xf32>
    %174 = arith.divf %172, %173 : vector<8x128xf32>
    %175 = vector.extract_strided_slice %157 {offsets = [0, 256], sizes = [8, 128], strides = [1, 1]} : vector<8x384xf32> to vector<8x128xf32>
    %176 = vector.extract_strided_slice %158 {offsets = [0, 256], sizes = [8, 128], strides = [1, 1]} : vector<8x384xf32> to vector<8x128xf32>
    %177 = arith.addf %176, %6 : vector<8x128xf32>
    %178 = arith.mulf %166, %177 : vector<8x128xf32>
    %179 = arith.addf %175, %178 : vector<8x128xf32>
    %180 = math.tanh %179 : vector<8x128xf32>
    %cst_29 = arith.constant 1.000000e+00 : f32
    %181 = vector.broadcast %cst_29 : f32 to vector<8x128xf32>
    %182 = arith.subf %181, %174 : vector<8x128xf32>
    %183 = arith.mulf %182, %180 : vector<8x128xf32>
    %184 = arith.mulf %174, %156 : vector<8x128xf32>
    %185 = arith.addf %183, %184 : vector<8x128xf32>
    %186 = vector.extract_strided_slice %10 {offsets = [48, 0], sizes = [8, 384], strides = [1, 1]} : vector<64x384xf32> to vector<8x384xf32>
    %cst_30 = arith.constant dense<0.000000e+00> : vector<8x384xf32>
    %187 = tpu.matmul %185, %1, %cst_30 {dimension_numbers = #tpu.dot_dimension_numbers<[1], [0], [0], [1], [0, 0, 1, 1], [], []>} : vector<8x128xf32>, vector<128x384xf32>, vector<8x384xf32> -> vector<8x384xf32>
    %188 = vector.extract_strided_slice %186 {offsets = [0, 0], sizes = [8, 128], strides = [1, 1]} : vector<8x384xf32> to vector<8x128xf32>
    %189 = vector.extract_strided_slice %187 {offsets = [0, 0], sizes = [8, 128], strides = [1, 1]} : vector<8x384xf32> to vector<8x128xf32>
    %190 = arith.addf %188, %189 : vector<8x128xf32>
    %191 = arith.negf %190 : vector<8x128xf32>
    %192 = math.exp %191 : vector<8x128xf32>
    %cst_31 = arith.constant 1.000000e+00 : f32
    %193 = vector.broadcast %cst_31 : f32 to vector<8x128xf32>
    %194 = arith.addf %193, %192 : vector<8x128xf32>
    %195 = arith.divf %193, %194 : vector<8x128xf32>
    %196 = vector.extract_strided_slice %186 {offsets = [0, 128], sizes = [8, 128], strides = [1, 1]} : vector<8x384xf32> to vector<8x128xf32>
    %197 = vector.extract_strided_slice %187 {offsets = [0, 128], sizes = [8, 128], strides = [1, 1]} : vector<8x384xf32> to vector<8x128xf32>
    %198 = arith.addf %196, %197 : vector<8x128xf32>
    %199 = arith.negf %198 : vector<8x128xf32>
    %200 = math.exp %199 : vector<8x128xf32>
    %cst_32 = arith.constant 1.000000e+00 : f32
    %201 = vector.broadcast %cst_32 : f32 to vector<8x128xf32>
    %202 = arith.addf %201, %200 : vector<8x128xf32>
    %203 = arith.divf %201, %202 : vector<8x128xf32>
    %204 = vector.extract_strided_slice %186 {offsets = [0, 256], sizes = [8, 128], strides = [1, 1]} : vector<8x384xf32> to vector<8x128xf32>
    %205 = vector.extract_strided_slice %187 {offsets = [0, 256], sizes = [8, 128], strides = [1, 1]} : vector<8x384xf32> to vector<8x128xf32>
    %206 = arith.addf %205, %6 : vector<8x128xf32>
    %207 = arith.mulf %195, %206 : vector<8x128xf32>
    %208 = arith.addf %204, %207 : vector<8x128xf32>
    %209 = math.tanh %208 : vector<8x128xf32>
    %cst_33 = arith.constant 1.000000e+00 : f32
    %210 = vector.broadcast %cst_33 : f32 to vector<8x128xf32>
    %211 = arith.subf %210, %203 : vector<8x128xf32>
    %212 = arith.mulf %211, %209 : vector<8x128xf32>
    %213 = arith.mulf %203, %185 : vector<8x128xf32>
    %214 = arith.addf %212, %213 : vector<8x128xf32>
    %215 = vector.extract_strided_slice %10 {offsets = [56, 0], sizes = [8, 384], strides = [1, 1]} : vector<64x384xf32> to vector<8x384xf32>
    %cst_34 = arith.constant dense<0.000000e+00> : vector<8x384xf32>
    %216 = tpu.matmul %214, %1, %cst_34 {dimension_numbers = #tpu.dot_dimension_numbers<[1], [0], [0], [1], [0, 0, 1, 1], [], []>} : vector<8x128xf32>, vector<128x384xf32>, vector<8x384xf32> -> vector<8x384xf32>
    %217 = vector.extract_strided_slice %215 {offsets = [0, 0], sizes = [8, 128], strides = [1, 1]} : vector<8x384xf32> to vector<8x128xf32>
    %218 = vector.extract_strided_slice %216 {offsets = [0, 0], sizes = [8, 128], strides = [1, 1]} : vector<8x384xf32> to vector<8x128xf32>
    %219 = arith.addf %217, %218 : vector<8x128xf32>
    %220 = arith.negf %219 : vector<8x128xf32>
    %221 = math.exp %220 : vector<8x128xf32>
    %cst_35 = arith.constant 1.000000e+00 : f32
    %222 = vector.broadcast %cst_35 : f32 to vector<8x128xf32>
    %223 = arith.addf %222, %221 : vector<8x128xf32>
    %224 = arith.divf %222, %223 : vector<8x128xf32>
    %225 = vector.extract_strided_slice %215 {offsets = [0, 128], sizes = [8, 128], strides = [1, 1]} : vector<8x384xf32> to vector<8x128xf32>
    %226 = vector.extract_strided_slice %216 {offsets = [0, 128], sizes = [8, 128], strides = [1, 1]} : vector<8x384xf32> to vector<8x128xf32>
    %227 = arith.addf %225, %226 : vector<8x128xf32>
    %228 = arith.negf %227 : vector<8x128xf32>
    %229 = math.exp %228 : vector<8x128xf32>
    %cst_36 = arith.constant 1.000000e+00 : f32
    %230 = vector.broadcast %cst_36 : f32 to vector<8x128xf32>
    %231 = arith.addf %230, %229 : vector<8x128xf32>
    %232 = arith.divf %230, %231 : vector<8x128xf32>
    %233 = vector.extract_strided_slice %215 {offsets = [0, 256], sizes = [8, 128], strides = [1, 1]} : vector<8x384xf32> to vector<8x128xf32>
    %234 = vector.extract_strided_slice %216 {offsets = [0, 256], sizes = [8, 128], strides = [1, 1]} : vector<8x384xf32> to vector<8x128xf32>
    %235 = arith.addf %234, %6 : vector<8x128xf32>
    %236 = arith.mulf %224, %235 : vector<8x128xf32>
    %237 = arith.addf %233, %236 : vector<8x128xf32>
    %238 = math.tanh %237 : vector<8x128xf32>
    %cst_37 = arith.constant 1.000000e+00 : f32
    %239 = vector.broadcast %cst_37 : f32 to vector<8x128xf32>
    %240 = arith.subf %239, %232 : vector<8x128xf32>
    %241 = arith.mulf %240, %238 : vector<8x128xf32>
    %242 = arith.mulf %232, %214 : vector<8x128xf32>
    %243 = arith.addf %241, %242 : vector<8x128xf32>
    %c152 = arith.constant 152 : index
    %c0_38 = arith.constant 0 : index
    %244 = vector.load %arg2[%c152, %c0_38] : memref<408x384xf32, #tpu.memory_space<vmem>>, vector<128x128xf32>
    %c280 = arith.constant 280 : index
    %c0_39 = arith.constant 0 : index
    %245 = vector.load %arg2[%c280, %c0_39] : memref<408x384xf32, #tpu.memory_space<vmem>>, vector<128x128xf32>
    %246 = vector.extract_strided_slice %2 {offsets = [2, 0], sizes = [1, 128], strides = [1, 1]} : vector<8x384xf32> to vector<1x128xf32>
    %247 = vector.extract_strided_slice %2 {offsets = [3, 0], sizes = [1, 2], strides = [1, 1]} : vector<8x384xf32> to vector<1x2xf32>
    %cst_40 = arith.constant dense<0.000000e+00> : vector<8x128xf32>
    %248 = tpu.matmul %243, %244, %cst_40 {dimension_numbers = #tpu.dot_dimension_numbers<[1], [0], [0], [1], [0, 0, 1, 1], [], []>} : vector<8x128xf32>, vector<128x128xf32>, vector<8x128xf32> -> vector<8x128xf32>
    %249 = vector.broadcast %246 : vector<1x128xf32> to vector<8x128xf32>
    %250 = arith.addf %248, %249 : vector<8x128xf32>
    %cst_41 = arith.constant 0.000000e+00 : f32
    %251 = vector.broadcast %cst_41 : f32 to vector<8x128xf32>
    %252 = arith.maximumf %250, %251 : vector<8x128xf32>
    %cst_42 = arith.constant dense<0.000000e+00> : vector<8x128xf32>
    %253 = tpu.matmul %252, %245, %cst_42 {dimension_numbers = #tpu.dot_dimension_numbers<[1], [0], [0], [1], [0, 0, 1, 1], [], []>} : vector<8x128xf32>, vector<128x128xf32>, vector<8x128xf32> -> vector<8x128xf32>
    %254 = vector.extract_strided_slice %253 {offsets = [0, 0], sizes = [2, 2], strides = [1, 1]} : vector<8x128xf32> to vector<2x2xf32>
    %255 = vector.broadcast %247 : vector<1x2xf32> to vector<2x2xf32>
    %256 = arith.addf %254, %255 : vector<2x2xf32>
    %257 = arith.negf %256 : vector<2x2xf32>
    %258 = math.exp %257 : vector<2x2xf32>
    %cst_43 = arith.constant 1.000000e+00 : f32
    %259 = vector.broadcast %cst_43 : f32 to vector<2x2xf32>
    %260 = arith.addf %259, %258 : vector<2x2xf32>
    %261 = arith.divf %259, %260 : vector<2x2xf32>
    %c0_44 = arith.constant 0 : index
    %c0_45 = arith.constant 0 : index
    %262 = vector.load %arg3[%c0_44, %c0_45] : memref<2x2xf32, #tpu.memory_space<vmem>>, vector<2x2xf32>
    tpu.vector_store %arg3[%c0_44, %c0_45], %261 {strides = array<i32>} : memref<2x2xf32, #tpu.memory_space<vmem>>, vector<2x2xf32>,
    return
  }
  func.func @transform_0(%arg0: i32) -> (i32, i32) {
    %c0_i32 = arith.constant 0 : i32
    %c0_i32_0 = arith.constant 0 : i32
    %c0_i32_1 = arith.constant 0 : i32
    return %c0_i32, %c0_i32_0 : i32, i32
  }
  func.func @transform_1(%arg0: i32) -> (i32, i32) {
    %c0_i32 = arith.constant 0 : i32
    %c0_i32_0 = arith.constant 0 : i32
    %c0_i32_1 = arith.constant 0 : i32
    return %c0_i32, %c0_i32_0 : i32, i32
  }
  func.func @transform_2(%arg0: i32) -> (i32, i32) {
    %c0_i32 = arith.constant 0 : i32
    %c0_i32_0 = arith.constant 0 : i32
    %c0_i32_1 = arith.constant 0 : i32
    return %c0_i32, %c0_i32_0 : i32, i32
  }
}

</mosaic_0001>

<bundles_post_ra>
// kernel: goal_predictor_forward.1
= control target key start
LH: loop header
LB: loop body
LE: loop exit
PB: predicated region body
PF: predicated region fallthrough
CT: control target
= control target key end

     0   :  { %7 = vsyncpa [#allocation3], 0  ;;  %s2229_s0 = inlined_call_operand.vmem [shape: f32[64,16], index: 0, kind: input, shape index: {}]   ;;  %s2230_s1 = inlined_call_operand.hbm [shape: f32[408,384], index: 1, kind: input, shape index: {}]   ;;  %s2231_s2 = inlined_call_operand.hbm [shape: f32[2,2], index: 2, kind: output, shape index: {}]  }
   0x1   :  { %8 = vsyncpa [#allocation4], 0  ;;  %s15_s11 = sshll.u32 %s2230_s1, 4  ;;  %s1454_s12 = smov [#allocation2]   ;;  %s16_s11 = int_to_ptr.hbm [resolvable:$true] %s15_s11 }
   0x2   :  { %s17_s13 = sshll.u32 %s1454_s12, 4  ;;  %s1455_s14 = smov 384   ;;  %s18_s13 = int_to_ptr.vmem [resolvable:$true] %s17_s13 }
   0x3   :  { %s1456_s15 = smov 24  }
   0x4   :  { %23 = dma.hbm_to_vmem [thread:$0]  %s16_s11, 19584, %s18_s13, [#allocation3], %s1455_s14, %s1455_s14, %s1456_s15  }
   0x5   :  { %1450 = dma.done.wait [#allocation3], 19584  }
   0x6   :  { %1451 = vsyncadd [#allocation3], 4294947712  ;;  %v31_v0 = vld [vmem:[#allocation2 + $0x18] sm:$0xff]  ;;  %v28_v2 = vld [vmem:[#allocation2] sm:$0xff]  ;;  %vm97_vm0 = vcmask 130048   ;;  %v1457_v39 = vmov 0.0  }
   0x7   :  { %v1477_v1 = vld [vmem:[#allocation2 + $0x198] sm:$0xff]  ;;  %136 = vmatpush.msra.mxu0 %v31_v0  ;;  %v1480_v3 = vld [vmem:[#allocation2 + $0x180] sm:$0xff]  ;;  %v1487_v5 = vld [vmem:[#allocation2 + $0x168] sm:$0xff]  ;;  %s1213_s6 = sshll.u32 %s2231_s2, 4  ;;  %s1214_s6 = int_to_ptr.hbm [resolvable:$true] %s1213_s6 }
   0x8   :  { %245 = vmatpush.msra.mxu3 %v1477_v1  ;;  %v1485_v4 = vld [vmem:[%s2229_s0] sm:$0xff]  ;;  %v1492_v6 = vld [vmem:[#allocation2 + $0x150] sm:$0xff]  ;;  %v1495_v7 = vld [vmem:[#allocation2 + $0x1a8] sm:$0xff] }
   0x9   :  { %137 = vmatpush.msra.mxu0 %v28_v2  ;;  %v1497_v8 = vld [vmem:[#allocation2 + $0x138] sm:$0xff]  ;;  %v1501_v9 = vld [vmem:[#allocation2 + $0x190] sm:$0xff]  ;;  %v1503_v10 = vld [vmem:[#allocation2 + $0x120] sm:$0xff] }
   0xa   :  { %246 = vmatpush.msra.mxu3 %v1480_v3  ;;  %1223 = vmatmul.msk.f32.vlgmr.msra.gmra.mxu0 %vm97_vm0, %v1485_v4  ;;  %v1506_v11 = vld [vmem:[#allocation2 + $0x178] sm:$0xff]  ;;  %v1512_v12 = vld [vmem:[%s2229_s0 + $0x8] sm:$0xff]  ;;  %v1517_v14 = vld [vmem:[#allocation2 + $0x160] sm:$0xff] }
   0xb   :  { %285 = vmatpush.msrb.mxu0 %v1495_v7  ;;  %v1514_v13 = vld [vmem:[#allocation2 + $0x108] sm:$0xff]  ;;  %v1522_v15 = vld [vmem:[#allocation2 + $0xf0] sm:$0xff]  ;;  %v1528_v17 = vld [vmem:[#allocation2 + $0xd8] sm:$0xff] }
   0xc   :  { %247 = vmatpush.msra.mxu3 %v1487_v5  ;;  %v1524_v16 = vld [vmem:[#allocation2 + $0x148] sm:$0xff]  ;;  %v1530_v18 = vld [vmem:[#allocation2 + $0x130] sm:$0xff]  ;;  %v1534_v19 = vld [vmem:[#allocation2 + $0xc0] sm:$0xff] }
   0xd   :  { %286 = vmatpush.msrb.mxu0 %v1501_v9  ;;  %v1540_v20 = vld [vmem:[%s2229_s0 + $0x10] sm:$0xff]  ;;  %v1543_v21 = vld [vmem:[#allocation2 + $0x118] sm:$0xff]  ;;  %v1545_v22 = vld [vmem:[#allocation2 + $0xa8] sm:$0xff] }
   0xe   :  { %248 = vmatpush.msra.mxu3 %v1492_v6  ;;  %v1549_v23 = vld [vmem:[#allocation2 + $0x100] sm:$0xff]  ;;  %v1553_v24 = vld [vmem:[#allocation2 + $0x90] sm:$0xff]  ;;  %v1557_v25 = vld [vmem:[#allocation2 + $0xe8] sm:$0xff] }
   0xf   :  { %287 = vmatpush.msrb.mxu0 %v1506_v11  ;;  %v1559_v26 = vld [vmem:[#allocation2 + $0x78] sm:$0xff]  ;;  %v1563_v27 = vld [vmem:[#allocation2 + $0xd0] sm:$0xff]  ;;  %v1565_v28 = vld [vmem:[#allocation2 + $0x60] sm:$0xff] }
  0x10   :  { %249 = vmatpush.msra.mxu3 %v1497_v8  ;;  %2252 = vst [vmem:[#allocation8_spill] sm:$0xff] %v1565_v28  ;;  %v1571_v29 = vld [vmem:[%s2229_s0 + $0x18] sm:$0xff]  ;;  %v1576_v31 = vld [vmem:[#allocation2 + $0x48] sm:$0xff]  ;;  %v1580_v32 = vld [vmem:[#allocation2 + $0xa0] sm:$0xff] }
  0x11   :  { %288 = vmatpush.msrb.mxu0 %v1517_v14  ;;  %v1574_v30 = vld [vmem:[#allocation2 + $0xb8] sm:$0xff]  ;;  %2253 = vst [vmem:[#allocation9_spill] sm:$0xff] %v1576_v31  ;;  %v1584_v33 = vld [vmem:[#allocation2 + $0x30] sm:$0xff]  ;;  %v33_v34 = vld [vmem:[#allocation2 + $0x28] sm:$0xff] }
  0x12   :  { %250 = vmatpush.msra.mxu3 %v1503_v10  ;;  %1224 = vmatmul.msk.f32.gmra.mxu0 %vm97_vm0, %v1512_v12  ;;  %2254 = vst [vmem:[#allocation10_spill] sm:$0xff] %v1584_v33  ;;  %v1588_v35 = vld [vmem:[#allocation2 + $0x88] sm:$0xff]  ;;  %v1590_v36 = vld [vmem:[#allocation2 + $0x1a0] sm:$0xff]  ;;  %v30_v37 = vld [vmem:[#allocation2 + $0x10] sm:$0xff] }
  0x13   :  { %289 = vmatpush.msrb.mxu0 %v1524_v16  ;;  %218 = vmatpush.msra.mxu2 %v33_v34  ;;  %v1594_v38 = vld [vmem:[#allocation2 + $0x70] sm:$0xff]  ;;  %v1597_v40 = vld [vmem:[#allocation2 + $0x188] sm:$0xff]  ;;  %v32_v41 = vld [vmem:[#allocation2 + $0x20] sm:$0xff] }
  0x14   :  { %251 = vmatpush.msra.mxu3 %v1514_v13  ;;  %2255 = vst [vmem:[#allocation11_spill] sm:$0xff] %v1594_v38  ;;  %v1599_v42 = vld [vmem:[#allocation2 + $0x58] sm:$0xff]  ;;  %v1605_v43 = vld [vmem:[%s2229_s0 + $0x20] sm:$0xff]  ;;  %v29_v44 = vld [vmem:[#allocation2 + $0x8] sm:$0xff]  ;;  %177 = vmatpush.msra.mxu1 %v32_v41 }
  0x15   :  { %290 = vmatpush.msrb.mxu0 %v1530_v18  ;;  %219 = vmatpush.msra.mxu2 %v30_v37  ;;  %2256 = vst [vmem:[#allocation12_spill] sm:$0xff] %v1599_v42  ;;  %v1608_v45 = vld [vmem:[#allocation2 + $0x170] sm:$0xff]  ;;  %v1614_v46 = vld [vmem:[#allocation2 + $0x40] sm:$0xff]  ;;  %v1618_v47 = vld [vmem:[#allocation2 + $0x158] sm:$0xff] }
  0x16   :  { %252 = vmatpush.msra.mxu3 %v1522_v15  ;;  %1239 = vmatmul.msk.f32.vlgmr.msra.gmra.mxu2 %vm97_vm0, %v1485_v4  ;;  %2257 = vst [vmem:[#allocation13_spill] sm:$0xff] %v1614_v46  ;;  %v1623_v48 = vld [vmem:[#allocation2 + $0x140] sm:$0xff]  ;;  %v1629_v49 = vld [vmem:[#allocation2 + $0x128] sm:$0xff]  ;;  %v1640_v51 = vld [vmem:[#allocation2 + $0x110] sm:$0xff] }
  0x17   :  { %291 = vmatpush.msrb.mxu0 %v1543_v21  ;;  %178 = vmatpush.msra.mxu1 %v29_v44  ;;  %v1637_v50 = vld [vmem:[%s2229_s0 + $0x28] sm:$0xff]  ;;  %v1649_v52 = vld [vmem:[#allocation2 + $0xf8] sm:$0xff]  ;;  %v1655_v53 = vld [vmem:[#allocation2 + $0xe0] sm:$0xff] }
  0x18   :  { %253 = vmatpush.msra.mxu3 %v1528_v17  ;;  %1231 = vmatmul.msk.f32.vlgmr.msra.gmra.mxu1 %vm97_vm0, %v1485_v4  ;;  %v1661_v54 = vld [vmem:[#allocation2 + $0xc8] sm:$0xff]  ;;  %v1669_v55 = vld [vmem:[%s2229_s0 + $0x30] sm:$0xff]  ;;  %v1681_v57 = vld [vmem:[#allocation2 + $0x98] sm:$0xff] }
  0x19   :  { %292 = vmatpush.msrb.mxu0 %v1549_v23  ;;  %353 = vmatpush.msrb.mxu1 %v1477_v1  ;;  %v1672_v56 = vld [vmem:[#allocation2 + $0xb0] sm:$0xff]  ;;  %v1687_v58 = vld [vmem:[#allocation2 + $0x80] sm:$0xff]  ;;  %v1693_v59 = vld [vmem:[#allocation2 + $0x68] sm:$0xff] }
  0x1a   :  { %254 = vmatpush.msra.mxu3 %v1534_v19  ;;  %1225 = vmatmul.msk.f32.gmra.mxu0 %vm97_vm0, %v1540_v20  ;;  %2258 = vst [vmem:[#allocation14_spill] sm:$0xff] %v1687_v58  ;;  %v1701_v60 = vld [vmem:[%s2229_s0 + $0x38] sm:$0xff]  ;;  %v1704_v61 = vld [vmem:[#allocation2 + $0x50] sm:$0xff]  ;;  %s1458_s0 = smov [#allocation5]  }
  0x1b   :  { %293 = vmatpush.msrb.mxu0 %v1557_v25  ;;  %373 = vmatpush.msrb.mxu2 %v1590_v36  ;;  %2259 = vst [vmem:[#allocation15_spill] sm:$0xff] %v1693_v59  ;;  %v1713_v62 = vld [vmem:[#allocation2 + $0x38] sm:$0xff]  ;;  %v82_v0 = vld [vmem:[#allocation2 + $0x1b0] sm:$0xff]  ;;  %s1211_s3 = sshll.u32 %s1458_s0, 4  ;;  %s1212_s3 = int_to_ptr.vmem [resolvable:$true] %s1211_s3 }
  0x1c   :  { %255 = vmatpush.msra.mxu3 %v1545_v22  ;;  %354 = vmatpush.msrb.mxu1 %v1480_v3  ;;  %2260 = vst [vmem:[#allocation16_spill] sm:$0xff] %v1704_v61  ;;  %v94_v2 = vperm.slane %v82_v0, 0 }
  0x1d   :  { %294 = vmatpush.msrb.mxu0 %v1563_v27  ;;  %374 = vmatpush.msrb.mxu2 %v1597_v40  ;;  %2261 = vst [vmem:[#allocation17_spill] sm:$0xff] %v1713_v62 }
  0x1e   :  { %256 = vmatpush.msra.mxu3 %v1553_v24  ;;  %1240 = vmatmul.msk.f32.gmra.mxu2 %vm97_vm0, %v1512_v12 }
  0x1f   :  { %295 = vmatpush.msrb.mxu0 %v1574_v30  ;;  %355 = vmatpush.msrb.mxu1 %v1487_v5 }
  0x20   :  { %257 = vmatpush.msra.mxu3 %v1559_v26  ;;  %375 = vmatpush.msrb.mxu2 %v1608_v45 }
  0x21   :  { %296 = vmatpush.msrb.mxu0 %v1580_v32  ;;  %356 = vmatpush.msrb.mxu1 %v1492_v6 }
  0x22   :  { %258 = vmatpush.msra.mxu3 %v1565_v28  ;;  %1226 = vmatmul.msk.f32.gmra.mxu0 %vm97_vm0, %v1571_v29 }
  0x23   :  { %297 = vmatpush.msrb.mxu0 %v1588_v35  ;;  %1232 = vmatmul.msk.f32.gmra.mxu1 %vm97_vm0, %v1512_v12 }
  0x24   :  { %259 = vmatpush.msra.mxu3 %v1576_v31  ;;  %376 = vmatpush.msrb.mxu2 %v1618_v47 }
  0x25   :  { %298 = vmatpush.msrb.mxu0 %v1594_v38  ;;  %357 = vmatpush.msrb.mxu1 %v1497_v8 }
  0x26   :  { %260 = vmatpush.msra.mxu3 %v1584_v33  ;;  %377 = vmatpush.msrb.mxu2 %v1623_v48 }
  0x27   :  { %261 = vmatmul.f32.vlgmr.msra.gmra.mxu3 %v1457_v39  ;;  %299 = vmatpush.msrb.mxu0 %v1599_v42 }
  0x28   :  { %265 = vmatpush.msrb.mxu3 %v1590_v36  ;;  %358 = vmatpush.msrb.mxu1 %v1503_v10 }
  0x29   :  { %300 = vmatpush.msrb.mxu0 %v1614_v46  ;;  %1241 = vmatmul.msk.f32.gmra.mxu2 %vm97_vm0, %v1540_v20 }
  0x2a   :  { %266 = vmatpush.msrb.mxu3 %v1597_v40  ;;  %1227 = vmatmul.msk.f32.gmra.mxu0 %vm97_vm0, %v1605_v43 }
  0x2b   :  { %461 = vmatpush.msra.mxu0 %v1477_v1  ;;  %359 = vmatpush.msrb.mxu1 %v1514_v13 }
  0x2c   :  { %267 = vmatpush.msrb.mxu3 %v1608_v45  ;;  %378 = vmatpush.msrb.mxu2 %v1629_v49 }
  0x2d   :  { %462 = vmatpush.msra.mxu0 %v1480_v3  ;;  %360 = vmatpush.msrb.mxu1 %v1522_v15 }
  0x2e   :  { %268 = vmatpush.msrb.mxu3 %v1618_v47  ;;  %1233 = vmatmul.msk.f32.gmra.mxu1 %vm97_vm0, %v1540_v20 }
  0x2f   :  { %463 = vmatpush.msra.mxu0 %v1487_v5  ;;  %379 = vmatpush.msrb.mxu2 %v1640_v51 }
  0x30   :  { %269 = vmatpush.msrb.mxu3 %v1623_v48  ;;  %361 = vmatpush.msrb.mxu1 %v1528_v17 }
  0x31   :  { %464 = vmatpush.msra.mxu0 %v1492_v6  ;;  %380 = vmatpush.msrb.mxu2 %v1649_v52 }
  0x32   :  { %270 = vmatpush.msrb.mxu3 %v1629_v49  ;;  %1228 = vmatmul.msk.f32.gmra.mxu0 %vm97_vm0, %v1637_v50 }
  0x33   :  { %362 = vmatpush.msrb.mxu1 %v1534_v19  ;;  %465 = vmatpush.msra.mxu0 %v1497_v8 }
  0x34   :  { %271 = vmatpush.msrb.mxu3 %v1640_v51  ;;  %1242 = vmatmul.msk.f32.gmra.mxu2 %vm97_vm0, %v1571_v29 }
  0x35   :  { %363 = vmatpush.msrb.mxu1 %v1545_v22  ;;  %381 = vmatpush.msrb.mxu2 %v1655_v53 }
  0x36   :  { %272 = vmatpush.msrb.mxu3 %v1649_v52  ;;  %1234 = vmatmul.msk.f32.gmra.mxu1 %vm97_vm0, %v1571_v29 }
  0x37   :  { %364 = vmatpush.msrb.mxu1 %v1553_v24  ;;  %382 = vmatpush.msrb.mxu2 %v1661_v54 }
  0x38   :  { %273 = vmatpush.msrb.mxu3 %v1655_v53  ;;  %466 = vmatpush.msra.mxu0 %v1503_v10 }
  0x39   :  { %365 = vmatpush.msrb.mxu1 %v1559_v26  ;;  %383 = vmatpush.msrb.mxu2 %v1672_v56 }
  0x3a   :  { %274 = vmatpush.msrb.mxu3 %v1661_v54  ;;  %1229 = vmatmul.msk.f32.gmra.mxu0 %vm97_vm0, %v1669_v55 }
  0x3b   :  { %366 = vmatpush.msrb.mxu1 %v1565_v28  ;;  %467 = vmatpush.msra.mxu0 %v1514_v13 }
  0x3c   :  { %275 = vmatpush.msrb.mxu3 %v1672_v56  ;;  %1243 = vmatmul.msk.f32.gmra.mxu2 %vm97_vm0, %v1605_v43 }
  0x3d   :  { %384 = vmatpush.msrb.mxu2 %v1681_v57  ;;  %367 = vmatpush.msrb.mxu1 %v1576_v31 }
  0x3e   :  { %276 = vmatpush.msrb.mxu3 %v1681_v57  ;;  %1235 = vmatmul.msk.f32.gmra.mxu1 %vm97_vm0, %v1605_v43 }
  0x3f   :  { %385 = vmatpush.msrb.mxu2 %v1687_v58  ;;  %368 = vmatpush.msrb.mxu1 %v1584_v33 }
  0x40   :  { %277 = vmatpush.msrb.mxu3 %v1687_v58  ;;  %468 = vmatpush.msra.mxu0 %v1522_v15 }
  0x41   :  { %481 = vmatpush.msra.mxu1 %v1590_v36  ;;  %386 = vmatpush.msrb.mxu2 %v1693_v59 }
  0x42   :  { %278 = vmatpush.msrb.mxu3 %v1693_v59  ;;  %1230 = vmatmul.msk.f32.gmra.mxu0 %vm97_vm0, %v1701_v60 }
  0x43   :  { %482 = vmatpush.msra.mxu1 %v1597_v40  ;;  %469 = vmatpush.msra.mxu0 %v1528_v17 }
  0x44   :  { %279 = vmatpush.msrb.mxu3 %v1704_v61  ;;  %1244 = vmatmul.msk.f32.gmra.mxu2 %vm97_vm0, %v1637_v50 }
  0x45   :  { %387 = vmatpush.msrb.mxu2 %v1704_v61  ;;  %483 = vmatpush.msra.mxu1 %v1608_v45 }
  0x46   :  { %280 = vmatpush.msrb.mxu3 %v1713_v62  ;;  %470 = vmatpush.msra.mxu0 %v1534_v19 }
  0x47   :  { %281 = vmatmul.f32.vlgmr.msrb.gmra.mxu3 %v1457_v39  ;;  %1236 = vmatmul.msk.f32.gmra.mxu1 %vm97_vm0, %v1637_v50 }
  0x48   :  { %393 = vmatpush.msra.mxu3 %v1495_v7  ;;  %388 = vmatpush.msrb.mxu2 %v1713_v62 }
  0x49   :  { %484 = vmatpush.msra.mxu1 %v1618_v47  ;;  %471 = vmatpush.msra.mxu0 %v1545_v22 }
  0x4a   :  { %394 = vmatpush.msra.mxu3 %v1501_v9  ;;  %301 = vmatmul.f32.vlgmr.msrb.gmra.mxu0 %v1457_v39 }
  0x4b   :  { %501 = vmatpush.msra.mxu2 %v1495_v7  ;;  %485 = vmatpush.msra.mxu1 %v1623_v48 }
  0x4c   :  { %395 = vmatpush.msra.mxu3 %v1506_v11  ;;  %1245 = vmatmul.msk.f32.gmra.mxu2 %vm97_vm0, %v1669_v55 }
  0x4d   :  { %502 = vmatpush.msra.mxu2 %v1501_v9  ;;  %486 = vmatpush.msra.mxu1 %v1629_v49 }
  0x4e   :  { %396 = vmatpush.msra.mxu3 %v1517_v14  ;;  %472 = vmatpush.msra.mxu0 %v1553_v24 }
  0x4f   :  { %503 = vmatpush.msra.mxu2 %v1506_v11  ;;  %487 = vmatpush.msra.mxu1 %v1640_v51 }
  0x50   :  { %397 = vmatpush.msra.mxu3 %v1524_v16  ;;  %1237 = vmatmul.msk.f32.gmra.mxu1 %vm97_vm0, %v1669_v55 }
  0x51   :  { %504 = vmatpush.msra.mxu2 %v1517_v14  ;;  %488 = vmatpush.msra.mxu1 %v1649_v52 }
  0x52   :  { %398 = vmatpush.msra.mxu3 %v1530_v18  ;;  %473 = vmatpush.msra.mxu0 %v1559_v26 }
  0x53   :  { %505 = vmatpush.msra.mxu2 %v1524_v16  ;;  %489 = vmatpush.msra.mxu1 %v1655_v53 }
  0x54   :  { %399 = vmatpush.msra.mxu3 %v1543_v21  ;;  %474 = vmatpush.msra.mxu0 %v1565_v28 }
  0x55   :  { %1246 = vmatmul.msk.f32.gmra.mxu2 %vm97_vm0, %v1701_v60  ;;  %490 = vmatpush.msra.mxu1 %v1661_v54 }
  0x56   :  { %400 = vmatpush.msra.mxu3 %v1549_v23  ;;  %506 = vmatpush.msra.mxu2 %v1530_v18 }
  0x57   :  { %491 = vmatpush.msra.mxu1 %v1672_v56  ;;  %475 = vmatpush.msra.mxu0 %v1576_v31 }
  0x58   :  { %401 = vmatpush.msra.mxu3 %v1557_v25  ;;  %1238 = vmatmul.msk.f32.gmra.mxu1 %vm97_vm0, %v1701_v60 }
  0x59   :  { %507 = vmatpush.msra.mxu2 %v1543_v21  ;;  %492 = vmatpush.msra.mxu1 %v1681_v57 }
  0x5a   :  { %402 = vmatpush.msra.mxu3 %v1563_v27  ;;  %476 = vmatpush.msra.mxu0 %v1584_v33 }
  0x5b   :  { %508 = vmatpush.msra.mxu2 %v1549_v23  ;;  %493 = vmatpush.msra.mxu1 %v1687_v58 }
  0x5c   :  { %403 = vmatpush.msra.mxu3 %v1574_v30  ;;  %589 = vmatpush.msrb.mxu0 %v1590_v36 }
  0x5d   :  { %509 = vmatpush.msra.mxu2 %v1557_v25  ;;  %494 = vmatpush.msra.mxu1 %v1693_v59 }
  0x5e   :  { %404 = vmatpush.msra.mxu3 %v1580_v32  ;;  %590 = vmatpush.msrb.mxu0 %v1597_v40 }
  0x5f   :  { %510 = vmatpush.msra.mxu2 %v1563_v27  ;;  %495 = vmatpush.msra.mxu1 %v1704_v61 }
  0x60   :  { %405 = vmatpush.msra.mxu3 %v1588_v35  ;;  %591 = vmatpush.msrb.mxu0 %v1608_v45 }
  0x61   :  { %511 = vmatpush.msra.mxu2 %v1574_v30  ;;  %496 = vmatpush.msra.mxu1 %v1713_v62 }
  0x62   :  { %406 = vmatpush.msra.mxu3 %v1594_v38  ;;  %592 = vmatpush.msrb.mxu0 %v1618_v47 }
  0x63   :  { %512 = vmatpush.msra.mxu2 %v1580_v32 }
  0x64   :  { %407 = vmatpush.msra.mxu3 %v1599_v42  ;;  %593 = vmatpush.msrb.mxu0 %v1623_v48 }
  0x65   :  { %513 = vmatpush.msra.mxu2 %v1588_v35 }
  0x66   :  { %408 = vmatpush.msra.mxu3 %v1614_v46  ;;  %594 = vmatpush.msrb.mxu0 %v1629_v49 }
  0x67   :  { %514 = vmatpush.msra.mxu2 %v1594_v38 }
  0x68   :  { %569 = vmatpush.msrb.mxu3 %v1477_v1  ;;  %595 = vmatpush.msrb.mxu0 %v1640_v51 }
  0x69   :  { %515 = vmatpush.msra.mxu2 %v1599_v42 }
  0x6a   :  { %570 = vmatpush.msrb.mxu3 %v1480_v3  ;;  %596 = vmatpush.msrb.mxu0 %v1649_v52 }
  0x6b   :  { %516 = vmatpush.msra.mxu2 %v1614_v46 }
  0x6c   :  { %571 = vmatpush.msrb.mxu3 %v1487_v5  ;;  %597 = vmatpush.msrb.mxu0 %v1655_v53 }
  0x6e   :  { %572 = vmatpush.msrb.mxu3 %v1492_v6  ;;  %598 = vmatpush.msrb.mxu0 %v1661_v54 }
  0x70   :  { %573 = vmatpush.msrb.mxu3 %v1497_v8  ;;  %599 = vmatpush.msrb.mxu0 %v1672_v56 }
  0x72   :  { %574 = vmatpush.msrb.mxu3 %v1503_v10  ;;  %600 = vmatpush.msrb.mxu0 %v1681_v57 }
  0x74   :  { %575 = vmatpush.msrb.mxu3 %v1514_v13  ;;  %601 = vmatpush.msrb.mxu0 %v1687_v58 }
  0x76   :  { %576 = vmatpush.msrb.mxu3 %v1522_v15  ;;  %602 = vmatpush.msrb.mxu0 %v1693_v59 }
  0x78   :  { %577 = vmatpush.msrb.mxu3 %v1528_v17  ;;  %603 = vmatpush.msrb.mxu0 %v1704_v61 }
  0x7a   :  { %578 = vmatpush.msrb.mxu3 %v1534_v19  ;;  %604 = vmatpush.msrb.mxu0 %v1713_v62 }
  0x7c   :  { %579 = vmatpush.msrb.mxu3 %v1545_v22 }
  0x7e   :  { %580 = vmatpush.msrb.mxu3 %v1553_v24 }
  0x80   :  { %581 = vmatpush.msrb.mxu3 %v1559_v26 }
  0x82   :  { %582 = vmatpush.msrb.mxu3 %v1565_v28 }
  0x84   :  { %583 = vmatpush.msrb.mxu3 %v1576_v31 }
  0x86   :  { %584 = vmatpush.msrb.mxu3 %v1584_v33 }
  0x87   :  { %v139_v63 = vpop.f32.mrf.mxu0 }
  0x88   :  { %v140_v41 = vadd.f32 %v139_v63, %v94_v2 }
  0x8f   :  { %v142_v4 = vpop.f32.mrf.mxu0 }
  0x90   :  { %v1840_v12 = vadd.f32 %v142_v4, %v94_v2 }
  0x92   :  { %2262 = vst [vmem:[#allocation18_spill] sm:$0xff] %v1840_v12 }
  0x97   :  { %v145_v20 = vpop.f32.mrf.mxu0 }
  0x98   :  { %v1842_v29 = vadd.f32 %v145_v20, %v94_v2 }
  0x9a   :  { %2263 = vst [vmem:[#allocation19_spill] sm:$0xff] %v1842_v29 }
  0x9f   :  { %v148_v34 = vpop.f32.mrf.mxu0 }
  0xa0   :  { %v1844_v37 = vadd.f32 %v148_v34, %v94_v2  ;;  %v83_v34 = vld [vmem:[#allocation2 + $0x1b8] sm:$0xff] }
  0xa1   :  { %v1854_v63 = vperm.slane %v83_v34, 0 }
  0xa2   :  { %2264 = vst [vmem:[#allocation20_spill] sm:$0xff] %v1844_v37 }
  0xa3   :  { %2269 = vst [vmem:[#allocation25_spill] sm:$0xff] %v1854_v63 }
  0xa7   :  { %v151_v39 = vpop.f32.mrf.mxu0 }
  0xa8   :  { %v1846_v43 = vadd.f32 %v151_v39, %v94_v2  ;;  %v180_v39 = vpop.f32.mrf.mxu1 }
  0xaa   :  { %2265 = vst [vmem:[#allocation21_spill] sm:$0xff] %v1846_v43  ;;  %v262_v44 = vpop.f32.mrf.mxu3 }
  0xab   :  { %v305_v50 = vadd.f32 %v262_v44, %v140_v41  ;;  %v181_v41 = vadd.f32 %v180_v39, %v1854_v63 }
  0xad   :  { %v1247_v55 = vmul.f32 -1.442695, %v305_v50 }
  0xaf   :  { %v154_v60 = vpop.f32.mrf.mxu0  ;;  %1269 = vpow2.f32 %v1247_v55 }
  0xb0   :  { %v1848_v62 = vadd.f32 %v154_v60, %v94_v2 }
  0xb2   :  { %2266 = vst [vmem:[#allocation22_spill] sm:$0xff] %v1848_v62 }
  0xb5   :  { %v1270_v0 = vpop.eup %1269 }
  0xb6   :  { %v309_v20 = vadd.f32 1.0, %v1270_v0 }
  0xb7   :  { %v157_v4 = vpop.f32.mrf.mxu0 }
  0xb8   :  { %v1850_v12 = vadd.f32 %v157_v4, %v94_v2  ;;  %1271 = vrcp.f32 %v309_v20  ;;  %v321_v34 = vand.u32 2147483648, %v309_v20  ;;  %vm315_vm2 = vweird.f32 %v309_v20 }
  0xba   :  { %2267 = vst [vmem:[#allocation23_spill] sm:$0xff] %v1850_v12  ;;  %v84_v12 = vld [vmem:[#allocation2 + $0x1c0] sm:$0xff] }
  0xbb   :  { %v1857_v0 = vperm.slane %v84_v12, 1 }
  0xbe   :  { %v1272_v43 = vpop.eup %1271 }
  0xbf   :  { %v160_v29 = vpop.f32.mrf.mxu0  ;;  %v311_v44 = vmul.f32 %v1272_v43, %v309_v20  ;;  %vm316_vm1 = vweird.f32 %v1272_v43 }
  0xc0   :  { %v1852_v37 = vadd.f32 %v160_v29, %v94_v2  ;;  %vm317_vm3 = vmor %vm315_vm2, %vm316_vm1 }
  0xc1   :  { %v312_v55 = vsub.f32 1.0, %v311_v44  ;;  %v221_v44 = vpop.f32.mrf.mxu2 }
  0xc2   :  { %2268 = vst [vmem:[#allocation24_spill] sm:$0xff] %v1852_v37  ;;  %v319_v37 = vand.u32 2147483647, %v309_v20 }
  0xc3   :  { %v313_v4 = vmul.f32 %v1272_v43, %v312_v55 }
  0xc4   :  { %vm320_vm4 = vcmp.eq.f32.partialorder %v319_v37, 8.507059e+37 }
  0xc5   :  { %v314_v33 = vadd.f32 %v1272_v43, %v313_v4 }
  0xc7   :  { %v302_v29 = vpop.f32.mrf.mxu0  ;;  %v318_v39 = vsel %vm317_vm3, %v1272_v43, %v314_v33 }
  0xc8   :  { %v345_v63 = vadd.f32 %v302_v29, %v1857_v0 }
  0xca   :  { %v282_v50 = vpop.f32.mrf.mxu3 }
  0xcb   :  { %v325_v60 = vadd.f32 %v282_v50, %v181_v41  ;;  %v1860_v41 = vperm.slane %v84_v12, 0 }
  0xcd   :  { %v1248_v62 = vmul.f32 -1.442695, %v325_v60  ;;  %v222_v55 = vadd.f32 %v221_v44, %v1860_v41 }
  0xcf   :  { %1273 = vpow2.f32 %v1248_v62  ;;  %v322_v62 = vor.u32 1.1754944e-38, %v321_v34 }
  0xd1   :  { %v323_v50 = vsel %vm320_vm4, %v322_v62, %v318_v39 }
  0xd2   :  { %v346_v60 = vmul.f32 %v345_v63, %v323_v50  ;;  %v2274_v50 = vld [vmem:[#allocation10_spill] sm:$0xff] }
  0xd4   :  { %v347_v31 = vadd.f32 %v346_v60, %v222_v55  ;;  %v2275_v60 = vld [vmem:[#allocation17_spill] sm:$0xff]  ;;  %v183_v55 = vpop.f32.mrf.mxu1 }
  0xd5   :  { %v1274_v2 = vpop.eup %1273 }
  0xd6   :  { %v329_v46 = vadd.f32 1.0, %v1274_v2 }
  0xd8   :  { %1275 = vrcp.f32 %v329_v46  ;;  %v341_v20 = vand.u32 2147483648, %v329_v46  ;;  %v339_v33 = vand.u32 2147483647, %v329_v46  ;;  %vm335_vm6 = vweird.f32 %v329_v46 }
  0xd9   :  { %1277 = vtanh.f32 %v347_v31  ;;  %v2270_v31 = vld [vmem:[#allocation12_spill] sm:$0xff] }
  0xda   :  { %v342_v12 = vor.u32 1.1754944e-38, %v341_v20  ;;  %vm340_vm8 = vcmp.eq.f32.partialorder %v339_v33, 8.507059e+37 }
  0xdc   :  { %v1916_v20 = vpop.f32.mrf.mxu1 }
  0xdd   :  { %2276 = vst [vmem:[#allocation26_spill] sm:$0xff] %v1916_v20 }
  0xde   :  { %v1276_v4 = vpop.eup %1275 }
  0xdf   :  { %v331_v61 = vmul.f32 %v1276_v4, %v329_v46  ;;  %vm336_vm5 = vweird.f32 %v1276_v4  ;;  %v1278_v63 = vpop.eup %1277  ;;  %v2272_v46 = vld [vmem:[#allocation16_spill] sm:$0xff] }
  0xe0   :  { %vm337_vm7 = vmor %vm335_vm6, %vm336_vm5 }
  0xe1   :  { %v332_v42 = vsub.f32 1.0, %v331_v61  ;;  %v2273_v61 = vld [vmem:[#allocation13_spill] sm:$0xff] }
  0xe3   :  { %v333_v2 = vmul.f32 %v1276_v4, %v332_v42  ;;  %v2271_v42 = vld [vmem:[#allocation9_spill] sm:$0xff] }
  0xe4   :  { %v1920_v33 = vpop.f32.mrf.mxu1 }
  0xe5   :  { %v334_v43 = vadd.f32 %v1276_v4, %v333_v2  ;;  %2278 = vst [vmem:[#allocation28_spill] sm:$0xff] %v1920_v33  ;;  %v2288_v33 = vld [vmem:[#allocation18_spill] sm:$0xff] }
  0xe7   :  { %v338_v29 = vsel %vm337_vm7, %v1276_v4, %v334_v43  ;;  %v224_v4 = vpop.f32.mrf.mxu2 }
  0xe8   :  { %v343_v37 = vsel %vm340_vm8, %v342_v12, %v338_v29 }
  0xe9   :  { %v349_v34 = vsub.f32 1.0, %v343_v37  ;;  %v351_v62 = vmul.f32 0.0, %v343_v37 }
  0xeb   :  { %v350_v39 = vmul.f32 %v1278_v63, %v349_v34 }
  0xec   :  { %v1924_v12 = vpop.f32.mrf.mxu1 }
  0xed   :  { %v1863_v44 = vadd.f32 %v351_v62, %v350_v39  ;;  %2280 = vst [vmem:[#allocation30_spill] sm:$0xff] %v1924_v12 }
  0xef   :  { %369 = vmatmul.f32.vlgmr.msrb.gmra.mxu1 %v1863_v44  ;;  %389 = vmatmul.f32.vlgmr.msrb.gmra.mxu2 %v1863_v44  ;;  %v1918_v2 = vpop.f32.mrf.mxu2 }
  0xf0   :  { %409 = vmatmul.f32.vlgmr.msra.gmra.mxu3 %v1863_v44  ;;  %609 = vmatpush.msrb.mxu1 %v1495_v7  ;;  %2277 = vst [vmem:[#allocation27_spill] sm:$0xff] %v1918_v2 }
  0xf1   :  { %677 = vmatpush.msrb.mxu2 %v1477_v1  ;;  %697 = vmatpush.msra.mxu3 %v1590_v36 }
  0xf2   :  { %610 = vmatpush.msrb.mxu1 %v1501_v9 }
  0xf3   :  { %678 = vmatpush.msrb.mxu2 %v1480_v3  ;;  %698 = vmatpush.msra.mxu3 %v1597_v40 }
  0xf4   :  { %611 = vmatpush.msrb.mxu1 %v1506_v11  ;;  %v1928_v37 = vpop.f32.mrf.mxu1 }
  0xf5   :  { %679 = vmatpush.msrb.mxu2 %v1487_v5  ;;  %699 = vmatpush.msra.mxu3 %v1608_v45  ;;  %2282 = vst [vmem:[#allocation32_spill] sm:$0xff] %v1928_v37 }
  0xf6   :  { %612 = vmatpush.msrb.mxu1 %v1517_v14 }
  0xf7   :  { %680 = vmatpush.msrb.mxu2 %v1492_v6  ;;  %700 = vmatpush.msra.mxu3 %v1618_v47  ;;  %v1922_v43 = vpop.f32.mrf.mxu2 }
  0xf8   :  { %613 = vmatpush.msrb.mxu1 %v1524_v16  ;;  %2279 = vst [vmem:[#allocation29_spill] sm:$0xff] %v1922_v43 }
  0xf9   :  { %681 = vmatpush.msrb.mxu2 %v1497_v8  ;;  %701 = vmatpush.msra.mxu3 %v1623_v48 }
  0xfa   :  { %614 = vmatpush.msrb.mxu1 %v1530_v18 }
  0xfb   :  { %682 = vmatpush.msrb.mxu2 %v1503_v10  ;;  %702 = vmatpush.msra.mxu3 %v1629_v49 }
  0xfc   :  { %615 = vmatpush.msrb.mxu1 %v1543_v21  ;;  %v1932_v63 = vpop.f32.mrf.mxu1 }
  0xfd   :  { %683 = vmatpush.msrb.mxu2 %v1514_v13  ;;  %703 = vmatpush.msra.mxu3 %v1640_v51  ;;  %2284 = vst [vmem:[#allocation34_spill] sm:$0xff] %v1932_v63 }
  0xfe   :  { %616 = vmatpush.msrb.mxu1 %v1549_v23 }
  0xff   :  { %684 = vmatpush.msrb.mxu2 %v1522_v15  ;;  %704 = vmatpush.msra.mxu3 %v1649_v52  ;;  %v1926_v29 = vpop.f32.mrf.mxu2 }
 0x100   :  { %617 = vmatpush.msrb.mxu1 %v1557_v25  ;;  %2281 = vst [vmem:[#allocation31_spill] sm:$0xff] %v1926_v29 }
 0x101   :  { %685 = vmatpush.msrb.mxu2 %v1528_v17  ;;  %705 = vmatpush.msra.mxu3 %v1655_v53 }
 0x102   :  { %618 = vmatpush.msrb.mxu1 %v1563_v27 }
 0x103   :  { %686 = vmatpush.msrb.mxu2 %v1534_v19  ;;  %706 = vmatpush.msra.mxu3 %v1661_v54 }
 0x104   :  { %619 = vmatpush.msrb.mxu1 %v1574_v30  ;;  %v1936_v62 = vpop.f32.mrf.mxu1 }
 0x105   :  { %687 = vmatpush.msrb.mxu2 %v1545_v22  ;;  %707 = vmatpush.msra.mxu3 %v1672_v56  ;;  %2286 = vst [vmem:[#allocation36_spill] sm:$0xff] %v1936_v62 }
 0x106   :  { %620 = vmatpush.msrb.mxu1 %v1580_v32 }
 0x107   :  { %688 = vmatpush.msrb.mxu2 %v1553_v24  ;;  %708 = vmatpush.msra.mxu3 %v1681_v57  ;;  %v1930_v34 = vpop.f32.mrf.mxu2 }
 0x108   :  { %621 = vmatpush.msrb.mxu1 %v1588_v35  ;;  %2283 = vst [vmem:[#allocation33_spill] sm:$0xff] %v1930_v34 }
 0x109   :  { %689 = vmatpush.msrb.mxu2 %v1559_v26  ;;  %709 = vmatpush.msra.mxu3 %v1687_v58 }
 0x10a   :  { %622 = vmatpush.msrb.mxu1 %v1594_v38 }
 0x10b   :  { %690 = vmatpush.msrb.mxu2 %v1565_v28  ;;  %710 = vmatpush.msra.mxu3 %v1693_v59 }
 0x10c   :  { %623 = vmatpush.msrb.mxu1 %v2270_v31 }
 0x10d   :  { %691 = vmatpush.msrb.mxu2 %v2271_v42  ;;  %711 = vmatpush.msra.mxu3 %v2272_v46 }
 0x10e   :  { %624 = vmatpush.msrb.mxu1 %v2273_v61 }
 0x10f   :  { %692 = vmatpush.msrb.mxu2 %v2274_v50  ;;  %712 = vmatpush.msra.mxu3 %v2275_v60  ;;  %v1934_v39 = vpop.f32.mrf.mxu2  ;;  %v2289_v50 = vld [vmem:[#allocation25_spill] sm:$0xff] }
 0x110   :  { %2285 = vst [vmem:[#allocation35_spill] sm:$0xff] %v1934_v39  ;;  %v184_v12 = vadd.f32 %v183_v55, %v2289_v50 }
 0x117   :  { %v1938_v20 = vpop.f32.mrf.mxu2 }
 0x118   :  { %2287 = vst [vmem:[#allocation37_spill] sm:$0xff] %v1938_v20 }
 0x16c   :  { %v370_v2 = vpop.f32.mrf.mxu1 }
 0x16d   :  { %v413_v60 = vadd.f32 %v370_v2, %v2288_v33 }
 0x16f   :  { %v1249_v43 = vmul.f32 -1.442695, %v413_v60 }
 0x171   :  { %1279 = vpow2.f32 %v1249_v43 }
 0x172   :  { %v390_v29 = vpop.f32.mrf.mxu2 }
 0x173   :  { %v433_v61 = vadd.f32 %v390_v29, %v184_v12  ;;  %v410_v55 = vpop.f32.mrf.mxu3 }
 0x174   :  { %v453_v29 = vadd.f32 %v410_v55, %v1857_v0 }
 0x175   :  { %v1250_v37 = vmul.f32 -1.442695, %v433_v61 }
 0x177   :  { %v1280_v46 = vpop.eup %1279  ;;  %1281 = vpow2.f32 %v1250_v37  ;;  %v225_v37 = vadd.f32 %v224_v4, %v1860_v41 }
 0x178   :  { %v417_v34 = vadd.f32 1.0, %v1280_v46 }
 0x17a   :  { %1283 = vrcp.f32 %v417_v34  ;;  %v429_v31 = vand.u32 2147483648, %v417_v34  ;;  %v427_v60 = vand.u32 2147483647, %v417_v34  ;;  %vm423_vm10 = vweird.f32 %v417_v34 }
 0x17c   :  { %v430_v61 = vor.u32 1.1754944e-38, %v429_v31  ;;  %vm428_vm12 = vcmp.eq.f32.partialorder %v427_v60, 8.507059e+37 }
 0x17d   :  { %v1282_v63 = vpop.eup %1281 }
 0x17e   :  { %v437_v39 = vadd.f32 1.0, %v1282_v63 }
 0x180   :  { %v1284_v42 = vpop.eup %1283  ;;  %1285 = vrcp.f32 %v437_v39  ;;  %v447_v28 = vand.u32 2147483647, %v437_v39  ;;  %vm443_vm14 = vweird.f32 %v437_v39 }
 0x181   :  { %v419_v62 = vmul.f32 %v1284_v42, %v417_v34  ;;  %vm424_vm9 = vweird.f32 %v1284_v42 }
 0x182   :  { %vm425_vm11 = vmor %vm423_vm10, %vm424_vm9  ;;  %vm448_vm0 = vcmp.eq.f32.partialorder %v447_v28, 8.507059e+37 }
 0x183   :  { %v420_v20 = vsub.f32 1.0, %v419_v62 }
 0x185   :  { %v421_v59 = vmul.f32 %v1284_v42, %v420_v20  ;;  %v449_v20 = vand.u32 2147483648, %v437_v39 }
 0x186   :  { %v1286_v2 = vpop.eup %1285 }
 0x187   :  { %v439_v33 = vmul.f32 %v1286_v2, %v437_v39  ;;  %v422_v43 = vadd.f32 %v1284_v42, %v421_v59  ;;  %vm444_vm13 = vweird.f32 %v1286_v2  ;;  %v450_v31 = vor.u32 1.1754944e-38, %v449_v20  ;;  %v2303_v20 = vld [vmem:[#allocation27_spill] sm:$0xff] }
 0x188   :  { %vm445_vm15 = vmor %vm443_vm14, %vm444_vm13 }
 0x189   :  { %v440_v12 = vsub.f32 1.0, %v439_v33  ;;  %v426_v46 = vsel %vm425_vm11, %v1284_v42, %v422_v43 }
 0x18a   :  { %v431_v63 = vsel %vm428_vm12, %v430_v61, %v426_v46 }
 0x18b   :  { %v441_v62 = vmul.f32 %v1286_v2, %v440_v12  ;;  %v454_v50 = vmul.f32 %v453_v29, %v431_v63 }
 0x18d   :  { %v455_v38 = vadd.f32 %v454_v50, %v225_v37  ;;  %v442_v58 = vadd.f32 %v1286_v2, %v441_v62 }
 0x18f   :  { %1287 = vtanh.f32 %v455_v38  ;;  %v446_v59 = vsel %vm445_vm15, %v1286_v2, %v442_v58 }
 0x190   :  { %v451_v42 = vsel %vm448_vm0, %v450_v31, %v446_v59  ;;  %v228_v59 = vadd.f32 %v2303_v20, %v1860_v41 }
 0x191   :  { %v457_v34 = vsub.f32 1.0, %v451_v42  ;;  %v459_v4 = vmul.f32 %v451_v42, %v1863_v44 }
 0x195   :  { %v1288_v60 = vpop.eup %1287 }
 0x196   :  { %v458_v55 = vmul.f32 %v1288_v60, %v457_v34 }
 0x198   :  { %v1945_v33 = vadd.f32 %v459_v4, %v458_v55 }
 0x19a   :  { %477 = vmatmul.f32.vlgmr.msra.gmra.mxu0 %v1945_v33  ;;  %497 = vmatmul.f32.vlgmr.msra.gmra.mxu1 %v1945_v33 }
 0x19b   :  { %517 = vmatmul.f32.vlgmr.msra.gmra.mxu2 %v1945_v33  ;;  %717 = vmatpush.msra.mxu0 %v1495_v7  ;;  %v2294_v7 = vld [vmem:[#allocation12_spill] sm:$0xff] }
 0x19c   :  { %785 = vmatpush.msra.mxu1 %v1477_v1  ;;  %805 = vmatpush.msra.mxu2 %v1590_v36  ;;  %v2290_v1 = vld [vmem:[#allocation14_spill] sm:$0xff] }
 0x19d   :  { %718 = vmatpush.msra.mxu0 %v1501_v9  ;;  %v2296_v9 = vld [vmem:[#allocation16_spill] sm:$0xff] }
 0x19e   :  { %786 = vmatpush.msra.mxu1 %v1480_v3  ;;  %806 = vmatpush.msra.mxu2 %v1597_v40  ;;  %v2291_v3 = vld [vmem:[#allocation11_spill] sm:$0xff] }
 0x19f   :  { %719 = vmatpush.msra.mxu0 %v1506_v11  ;;  %v2298_v11 = vld [vmem:[#allocation10_spill] sm:$0xff] }
 0x1a0   :  { %787 = vmatpush.msra.mxu1 %v1487_v5  ;;  %807 = vmatpush.msra.mxu2 %v1608_v45  ;;  %v2292_v5 = vld [vmem:[#allocation8_spill] sm:$0xff] }
 0x1a1   :  { %720 = vmatpush.msra.mxu0 %v1517_v14  ;;  %v2300_v14 = vld [vmem:[#allocation25_spill] sm:$0xff] }
 0x1a2   :  { %788 = vmatpush.msra.mxu1 %v1492_v6  ;;  %808 = vmatpush.msra.mxu2 %v1618_v47  ;;  %v2293_v6 = vld [vmem:[#allocation15_spill] sm:$0xff] }
 0x1a3   :  { %721 = vmatpush.msra.mxu0 %v1524_v16 }
 0x1a4   :  { %789 = vmatpush.msra.mxu1 %v1497_v8  ;;  %809 = vmatpush.msra.mxu2 %v1623_v48  ;;  %v2295_v8 = vld [vmem:[#allocation9_spill] sm:$0xff] }
 0x1a5   :  { %722 = vmatpush.msra.mxu0 %v1530_v18 }
 0x1a6   :  { %790 = vmatpush.msra.mxu1 %v1503_v10  ;;  %810 = vmatpush.msra.mxu2 %v1629_v49  ;;  %v2297_v10 = vld [vmem:[#allocation13_spill] sm:$0xff] }
 0x1a7   :  { %723 = vmatpush.msra.mxu0 %v1543_v21 }
 0x1a8   :  { %791 = vmatpush.msra.mxu1 %v1514_v13  ;;  %811 = vmatpush.msra.mxu2 %v1640_v51  ;;  %v2299_v13 = vld [vmem:[#allocation17_spill] sm:$0xff] }
 0x1a9   :  { %724 = vmatpush.msra.mxu0 %v1549_v23 }
 0x1aa   :  { %792 = vmatpush.msra.mxu1 %v1522_v15  ;;  %812 = vmatpush.msra.mxu2 %v1649_v52  ;;  %v2301_v15 = vld [vmem:[#allocation26_spill] sm:$0xff] }
 0x1ab   :  { %725 = vmatpush.msra.mxu0 %v1557_v25  ;;  %v187_v16 = vadd.f32 %v2301_v15, %v2300_v14  ;;  %v2010_v15 = vld [vmem:[#allocation2 + $0x1a8] sm:$0xff] }
 0x1ac   :  { %793 = vmatpush.msra.mxu1 %v1528_v17  ;;  %813 = vmatpush.msra.mxu2 %v1655_v53 }
 0x1ad   :  { %726 = vmatpush.msra.mxu0 %v1563_v27 }
 0x1ae   :  { %794 = vmatpush.msra.mxu1 %v1534_v19  ;;  %814 = vmatpush.msra.mxu2 %v1661_v54  ;;  %v2302_v19 = vld [vmem:[#allocation19_spill] sm:$0xff] }
 0x1af   :  { %727 = vmatpush.msra.mxu0 %v1574_v30 }
 0x1b0   :  { %795 = vmatpush.msra.mxu1 %v1545_v22  ;;  %815 = vmatpush.msra.mxu2 %v1672_v56 }
 0x1b1   :  { %728 = vmatpush.msra.mxu0 %v1580_v32 }
 0x1b2   :  { %796 = vmatpush.msra.mxu1 %v1553_v24  ;;  %816 = vmatpush.msra.mxu2 %v1681_v57 }
 0x1b3   :  { %729 = vmatpush.msra.mxu0 %v1588_v35 }
 0x1b4   :  { %797 = vmatpush.msra.mxu1 %v1559_v26  ;;  %817 = vmatpush.msra.mxu2 %v2290_v1 }
 0x1b5   :  { %730 = vmatpush.msra.mxu0 %v2291_v3 }
 0x1b6   :  { %798 = vmatpush.msra.mxu1 %v2292_v5  ;;  %818 = vmatpush.msra.mxu2 %v2293_v6 }
 0x1b7   :  { %731 = vmatpush.msra.mxu0 %v2294_v7 }
 0x1b8   :  { %799 = vmatpush.msra.mxu1 %v2295_v8  ;;  %819 = vmatpush.msra.mxu2 %v2296_v9 }
 0x1b9   :  { %732 = vmatpush.msra.mxu0 %v2297_v10 }
 0x1ba   :  { %800 = vmatpush.msra.mxu1 %v2298_v11  ;;  %820 = vmatpush.msra.mxu2 %v2299_v13 }
 0x217   :  { %v478_v17 = vpop.f32.mrf.mxu0  ;;  %v498_v18 = vpop.f32.mrf.mxu1 }
 0x218   :  { %v521_v21 = vadd.f32 %v478_v17, %v2302_v19  ;;  %v541_v22 = vadd.f32 %v498_v18, %v187_v16  ;;  %v2013_v16 = vld [vmem:[#allocation2 + $0x198] sm:$0xff]  ;;  %v2017_v17 = vld [vmem:[#allocation2 + $0x190] sm:$0xff]  ;;  %v2027_v19 = vld [vmem:[#allocation2 + $0x168] sm:$0xff] }
 0x219   :  { %v2024_v18 = vld [vmem:[#allocation2 + $0x178] sm:$0xff] }
 0x21a   :  { %v1251_v23 = vmul.f32 -1.442695, %v521_v21  ;;  %v1252_v24 = vmul.f32 -1.442695, %v541_v22  ;;  %v2034_v21 = vld [vmem:[#allocation2 + $0x150] sm:$0xff]  ;;  %v2041_v22 = vld [vmem:[#allocation2 + $0x138] sm:$0xff] }
 0x21c   :  { %1289 = vpow2.f32 %v1251_v23  ;;  %v2048_v23 = vld [vmem:[#allocation2 + $0x120] sm:$0xff] }
 0x21d   :  { %1291 = vpow2.f32 %v1252_v24  ;;  %v2055_v24 = vld [vmem:[#allocation2 + $0x108] sm:$0xff] }
 0x21e   :  { %v518_v61 = vpop.f32.mrf.mxu2 }
 0x21f   :  { %v561_v37 = vadd.f32 %v518_v61, %v1857_v0  ;;  %v2305_v61 = vld [vmem:[#allocation20_spill] sm:$0xff] }
 0x222   :  { %v1290_v25 = vpop.eup %1289 }
 0x223   :  { %v1292_v26 = vpop.eup %1291  ;;  %v525_v27 = vadd.f32 1.0, %v1290_v25  ;;  %v2062_v25 = vld [vmem:[#allocation2 + $0xf0] sm:$0xff] }
 0x224   :  { %v545_v28 = vadd.f32 1.0, %v1292_v26  ;;  %v2069_v26 = vld [vmem:[#allocation2 + $0xd8] sm:$0xff] }
 0x225   :  { %1293 = vrcp.f32 %v525_v27  ;;  %v537_v50 = vand.u32 2147483648, %v525_v27  ;;  %v535_v2 = vand.u32 2147483647, %v525_v27  ;;  %vm531_vm2 = vweird.f32 %v525_v27 }
 0x226   :  { %1295 = vrcp.f32 %v545_v28  ;;  %v557_v42 = vand.u32 2147483648, %v545_v28  ;;  %vm551_vm6 = vweird.f32 %v545_v28  ;;  %v555_v34 = vand.u32 2147483647, %v545_v28 }
 0x227   :  { %v538_v46 = vor.u32 1.1754944e-38, %v537_v50  ;;  %vm536_vm4 = vcmp.eq.f32.partialorder %v535_v2, 8.507059e+37 }
 0x228   :  { %v558_v4 = vor.u32 1.1754944e-38, %v557_v42  ;;  %vm556_vm8 = vcmp.eq.f32.partialorder %v555_v34, 8.507059e+37 }
 0x22b   :  { %v1294_v30 = vpop.eup %1293 }
 0x22c   :  { %v1296_v32 = vpop.eup %1295  ;;  %v527_v35 = vmul.f32 %v1294_v30, %v525_v27  ;;  %vm532_vm1 = vweird.f32 %v1294_v30  ;;  %v2076_v27 = vld [vmem:[#allocation2 + $0xc0] sm:$0xff] }
 0x22d   :  { %v547_v38 = vmul.f32 %v1296_v32, %v545_v28  ;;  %vm533_vm3 = vmor %vm531_vm2, %vm532_vm1  ;;  %vm552_vm5 = vweird.f32 %v1296_v32  ;;  %v2083_v28 = vld [vmem:[#allocation2 + $0xa8] sm:$0xff] }
 0x22e   :  { %v528_v58 = vsub.f32 1.0, %v527_v35  ;;  %vm553_vm7 = vmor %vm551_vm6, %vm552_vm5  ;;  %v2104_v35 = vld [vmem:[#allocation2 + $0x60] sm:$0xff] }
 0x22f   :  { %v548_v44 = vsub.f32 1.0, %v547_v38  ;;  %v2111_v38 = vld [vmem:[#allocation2 + $0x48] sm:$0xff] }
 0x230   :  { %v529_v39 = vmul.f32 %v1294_v30, %v528_v58  ;;  %v2118_v58 = vld [vmem:[#allocation2 + $0x30] sm:$0xff] }
 0x231   :  { %v549_v43 = vmul.f32 %v1296_v32, %v548_v44 }
 0x232   :  { %v530_v12 = vadd.f32 %v1294_v30, %v529_v39 }
 0x233   :  { %v550_v62 = vadd.f32 %v1296_v32, %v549_v43 }
 0x234   :  { %v534_v29 = vsel %vm533_vm3, %v1294_v30, %v530_v12  ;;  %v2090_v30 = vld [vmem:[#allocation2 + $0x90] sm:$0xff] }
 0x235   :  { %v539_v63 = vsel %vm536_vm4, %v538_v46, %v534_v29  ;;  %v554_v55 = vsel %vm553_vm7, %v1296_v32, %v550_v62  ;;  %v2097_v32 = vld [vmem:[#allocation2 + $0x78] sm:$0xff] }
 0x236   :  { %v562_v31 = vmul.f32 %v561_v37, %v539_v63  ;;  %v559_v3 = vsel %vm556_vm8, %v558_v4, %v554_v55 }
 0x237   :  { %v565_v5 = vsub.f32 1.0, %v559_v3  ;;  %v567_v10 = vmul.f32 %v559_v3, %v1945_v33  ;;  %v2020_v33 = vld [vmem:[#allocation2 + $0x180] sm:$0xff] }
 0x238   :  { %v563_v60 = vadd.f32 %v562_v31, %v228_v59 }
 0x23a   :  { %1297 = vtanh.f32 %v563_v60 }
 0x240   :  { %v1298_v7 = vpop.eup %1297 }
 0x241   :  { %v566_v8 = vmul.f32 %v1298_v7, %v565_v5 }
 0x243   :  { %v2005_v11 = vadd.f32 %v567_v10, %v566_v8 }
 0x245   :  { %585 = vmatmul.f32.vlgmr.msrb.gmra.mxu3 %v2005_v11  ;;  %605 = vmatmul.f32.vlgmr.msrb.gmra.mxu0 %v2005_v11 }
 0x246   :  { %625 = vmatmul.f32.vlgmr.msrb.gmra.mxu1 %v2005_v11  ;;  %825 = vmatpush.msrb.mxu3 %v2010_v15 }
 0x247   :  { %893 = vmatpush.msrb.mxu0 %v2013_v16  ;;  %913 = vmatpush.msrb.mxu1 %v1590_v36  ;;  %v2031_v36 = vld [vmem:[#allocation2 + $0x160] sm:$0xff] }
 0x248   :  { %826 = vmatpush.msrb.mxu3 %v2017_v17 }
 0x249   :  { %894 = vmatpush.msrb.mxu0 %v2020_v33  ;;  %914 = vmatpush.msrb.mxu1 %v1597_v40  ;;  %v2038_v40 = vld [vmem:[#allocation2 + $0x148] sm:$0xff] }
 0x24a   :  { %827 = vmatpush.msrb.mxu3 %v2024_v18 }
 0x24b   :  { %895 = vmatpush.msrb.mxu0 %v2027_v19  ;;  %915 = vmatpush.msrb.mxu1 %v1608_v45  ;;  %v2045_v45 = vld [vmem:[#allocation2 + $0x130] sm:$0xff] }
 0x24c   :  { %828 = vmatpush.msrb.mxu3 %v2031_v36 }
 0x24d   :  { %896 = vmatpush.msrb.mxu0 %v2034_v21  ;;  %916 = vmatpush.msrb.mxu1 %v1618_v47  ;;  %v2052_v47 = vld [vmem:[#allocation2 + $0x118] sm:$0xff] }
 0x24e   :  { %829 = vmatpush.msrb.mxu3 %v2038_v40 }
 0x24f   :  { %897 = vmatpush.msrb.mxu0 %v2041_v22  ;;  %917 = vmatpush.msrb.mxu1 %v1623_v48  ;;  %v2059_v48 = vld [vmem:[#allocation2 + $0x100] sm:$0xff] }
 0x250   :  { %830 = vmatpush.msrb.mxu3 %v2045_v45 }
 0x251   :  { %898 = vmatpush.msrb.mxu0 %v2048_v23  ;;  %918 = vmatpush.msrb.mxu1 %v1629_v49  ;;  %v2066_v49 = vld [vmem:[#allocation2 + $0xe8] sm:$0xff] }
 0x252   :  { %831 = vmatpush.msrb.mxu3 %v2052_v47 }
 0x253   :  { %899 = vmatpush.msrb.mxu0 %v2055_v24  ;;  %919 = vmatpush.msrb.mxu1 %v1640_v51  ;;  %v2073_v51 = vld [vmem:[#allocation2 + $0xd0] sm:$0xff] }
 0x254   :  { %832 = vmatpush.msrb.mxu3 %v2059_v48 }
 0x255   :  { %900 = vmatpush.msrb.mxu0 %v2062_v25  ;;  %920 = vmatpush.msrb.mxu1 %v1649_v52  ;;  %v2080_v52 = vld [vmem:[#allocation2 + $0xb8] sm:$0xff] }
 0x256   :  { %833 = vmatpush.msrb.mxu3 %v2066_v49 }
 0x257   :  { %901 = vmatpush.msrb.mxu0 %v2069_v26  ;;  %921 = vmatpush.msrb.mxu1 %v1655_v53  ;;  %v2087_v53 = vld [vmem:[#allocation2 + $0xa0] sm:$0xff] }
 0x258   :  { %834 = vmatpush.msrb.mxu3 %v2073_v51 }
 0x259   :  { %902 = vmatpush.msrb.mxu0 %v2076_v27  ;;  %922 = vmatpush.msrb.mxu1 %v1661_v54  ;;  %v2094_v54 = vld [vmem:[#allocation2 + $0x88] sm:$0xff] }
 0x25a   :  { %835 = vmatpush.msrb.mxu3 %v2080_v52 }
 0x25b   :  { %903 = vmatpush.msrb.mxu0 %v2083_v28  ;;  %923 = vmatpush.msrb.mxu1 %v1672_v56  ;;  %v2101_v56 = vld [vmem:[#allocation2 + $0x70] sm:$0xff] }
 0x25c   :  { %836 = vmatpush.msrb.mxu3 %v2087_v53 }
 0x25d   :  { %904 = vmatpush.msrb.mxu0 %v2090_v30  ;;  %924 = vmatpush.msrb.mxu1 %v1681_v57  ;;  %v2108_v57 = vld [vmem:[#allocation2 + $0x58] sm:$0xff] }
 0x25e   :  { %837 = vmatpush.msrb.mxu3 %v2094_v54 }
 0x25f   :  { %905 = vmatpush.msrb.mxu0 %v2097_v32  ;;  %925 = vmatpush.msrb.mxu1 %v2290_v1  ;;  %v2115_v1 = vld [vmem:[#allocation2 + $0x40] sm:$0xff] }
 0x260   :  { %838 = vmatpush.msrb.mxu3 %v2101_v56 }
 0x261   :  { %906 = vmatpush.msrb.mxu0 %v2104_v35  ;;  %926 = vmatpush.msrb.mxu1 %v2293_v6  ;;  %v2304_v6 = vld [vmem:[#allocation28_spill] sm:$0xff] }
 0x262   :  { %839 = vmatpush.msrb.mxu3 %v2108_v57  ;;  %v190_v44 = vadd.f32 %v2304_v6, %v2300_v14 }
 0x263   :  { %907 = vmatpush.msrb.mxu0 %v2111_v38  ;;  %927 = vmatpush.msrb.mxu1 %v2296_v9 }
 0x264   :  { %840 = vmatpush.msrb.mxu3 %v2115_v1 }
 0x265   :  { %908 = vmatpush.msrb.mxu0 %v2118_v58  ;;  %928 = vmatpush.msrb.mxu1 %v2299_v13 }
 0x2c2   :  { %v606_v50 = vpop.f32.mrf.mxu0 }
 0x2c3   :  { %v649_v39 = vadd.f32 %v606_v50, %v190_v44  ;;  %v626_v3 = vpop.f32.mrf.mxu1  ;;  %v2306_v50 = vld [vmem:[#allocation29_spill] sm:$0xff] }
 0x2c4   :  { %v669_v8 = vadd.f32 %v626_v3, %v1857_v0 }
 0x2c5   :  { %v1254_v2 = vmul.f32 -1.442695, %v649_v39  ;;  %v231_v39 = vadd.f32 %v2306_v50, %v1860_v41 }
 0x2c7   :  { %1299 = vpow2.f32 %v1254_v2 }
 0x2c8   :  { %v586_v43 = vpop.f32.mrf.mxu3 }
 0x2c9   :  { %v629_v9 = vadd.f32 %v586_v43, %v2305_v61 }
 0x2cb   :  { %v1253_v12 = vmul.f32 -1.442695, %v629_v9 }
 0x2cd   :  { %v1300_v46 = vpop.eup %1299  ;;  %1301 = vpow2.f32 %v1253_v12 }
 0x2ce   :  { %v653_v29 = vadd.f32 1.0, %v1300_v46 }
 0x2d0   :  { %1303 = vrcp.f32 %v653_v29  ;;  %v665_v2 = vand.u32 2147483648, %v653_v29  ;;  %vm659_vm14 = vweird.f32 %v653_v29  ;;  %v663_v61 = vand.u32 2147483647, %v653_v29 }
 0x2d2   :  { %v666_v46 = vor.u32 1.1754944e-38, %v665_v2  ;;  %vm664_vm0 = vcmp.eq.f32.partialorder %v663_v61, 8.507059e+37 }
 0x2d3   :  { %v1302_v37 = vpop.eup %1301 }
 0x2d4   :  { %v633_v63 = vadd.f32 1.0, %v1302_v37 }
 0x2d6   :  { %1305 = vrcp.f32 %v633_v63  ;;  %v1304_v62 = vpop.eup %1303  ;;  %v645_v34 = vand.u32 2147483648, %v633_v63  ;;  %v643_v55 = vand.u32 2147483647, %v633_v63  ;;  %vm639_vm10 = vweird.f32 %v633_v63 }
 0x2d7   :  { %v655_v13 = vmul.f32 %v1304_v62, %v653_v29  ;;  %vm660_vm13 = vweird.f32 %v1304_v62  ;;  %v1385_v29 = vld [vmem:[#allocation2 + $0x1a0] sm:$0xff] }
 0x2d8   :  { %v646_v7 = vor.u32 1.1754944e-38, %v645_v34  ;;  %vm644_vm12 = vcmp.eq.f32.partialorder %v643_v55, 8.507059e+37  ;;  %vm661_vm15 = vmor %vm659_vm14, %vm660_vm13 }
 0x2d9   :  { %v656_v31 = vsub.f32 1.0, %v655_v13 }
 0x2db   :  { %v657_v4 = vmul.f32 %v1304_v62, %v656_v31 }
 0x2dc   :  { %v1306_v20 = vpop.eup %1305 }
 0x2dd   :  { %v635_v59 = vmul.f32 %v1306_v20, %v633_v63  ;;  %vm640_vm9 = vweird.f32 %v1306_v20  ;;  %v658_v44 = vadd.f32 %v1304_v62, %v657_v4 }
 0x2de   :  { %vm641_vm11 = vmor %vm639_vm10, %vm640_vm9 }
 0x2df   :  { %v636_v42 = vsub.f32 1.0, %v635_v59  ;;  %v662_v12 = vsel %vm661_vm15, %v1304_v62, %v658_v44  ;;  %v1386_v62 = vld [vmem:[#allocation2 + $0x188] sm:$0xff] }
 0x2e0   :  { %v667_v37 = vsel %vm664_vm0, %v666_v46, %v662_v12 }
 0x2e1   :  { %v637_v60 = vmul.f32 %v1306_v20, %v636_v42  ;;  %v673_v63 = vsub.f32 1.0, %v667_v37  ;;  %v675_v59 = vmul.f32 %v667_v37, %v2005_v11  ;;  %v1387_v11 = vld [vmem:[#allocation2 + $0x170] sm:$0xff]  ;;  %v1388_v42 = vld [vmem:[#allocation2 + $0x158] sm:$0xff] }
 0x2e3   :  { %v638_v5 = vadd.f32 %v1306_v20, %v637_v60 }
 0x2e5   :  { %v642_v10 = vsel %vm641_vm11, %v1306_v20, %v638_v5 }
 0x2e6   :  { %v647_v6 = vsel %vm644_vm12, %v646_v7, %v642_v10 }
 0x2e7   :  { %v670_v43 = vmul.f32 %v669_v8, %v647_v6 }
 0x2e9   :  { %v671_v9 = vadd.f32 %v670_v43, %v231_v39 }
 0x2eb   :  { %1307 = vtanh.f32 %v671_v9 }
 0x2f1   :  { %v1308_v13 = vpop.eup %1307 }
 0x2f2   :  { %v674_v20 = vmul.f32 %v1308_v13, %v673_v63 }
 0x2f4   :  { %v2129_v31 = vadd.f32 %v675_v59, %v674_v20 }
 0x2f6   :  { %693 = vmatmul.f32.vlgmr.msrb.gmra.mxu2 %v2129_v31  ;;  %713 = vmatmul.f32.vlgmr.msra.gmra.mxu3 %v2129_v31 }
 0x2f7   :  { %733 = vmatmul.f32.vlgmr.msra.gmra.mxu0 %v2129_v31  ;;  %933 = vmatpush.msrb.mxu2 %v2010_v15 }
 0x2f8   :  { %1001 = vmatpush.msra.mxu3 %v2013_v16  ;;  %1021 = vmatpush.msra.mxu0 %v1385_v29  ;;  %v1389_v16 = vld [vmem:[#allocation2 + $0x140] sm:$0xff] }
 0x2f9   :  { %934 = vmatpush.msrb.mxu2 %v2017_v17 }
 0x2fa   :  { %1002 = vmatpush.msra.mxu3 %v2020_v33  ;;  %1022 = vmatpush.msra.mxu0 %v1386_v62  ;;  %v1390_v33 = vld [vmem:[#allocation2 + $0x128] sm:$0xff] }
 0x2fb   :  { %935 = vmatpush.msrb.mxu2 %v2024_v18 }
 0x2fc   :  { %1003 = vmatpush.msra.mxu3 %v2027_v19  ;;  %1023 = vmatpush.msra.mxu0 %v1387_v11  ;;  %v1391_v19 = vld [vmem:[#allocation2 + $0x110] sm:$0xff]  ;;  %v2309_v11 = vld [vmem:[#allocation31_spill] sm:$0xff] }
 0x2fd   :  { %936 = vmatpush.msrb.mxu2 %v2031_v36 }
 0x2fe   :  { %1004 = vmatpush.msra.mxu3 %v2034_v21  ;;  %1024 = vmatpush.msra.mxu0 %v1388_v42  ;;  %v1392_v21 = vld [vmem:[#allocation2 + $0xf8] sm:$0xff]  ;;  %v234_v42 = vadd.f32 %v2309_v11, %v1860_v41 }
 0x2ff   :  { %937 = vmatpush.msrb.mxu2 %v2038_v40 }
 0x300   :  { %1005 = vmatpush.msra.mxu3 %v2041_v22  ;;  %1025 = vmatpush.msra.mxu0 %v1389_v16  ;;  %v1393_v22 = vld [vmem:[#allocation2 + $0xe0] sm:$0xff] }
 0x301   :  { %938 = vmatpush.msrb.mxu2 %v2045_v45 }
 0x302   :  { %1006 = vmatpush.msra.mxu3 %v2048_v23  ;;  %1026 = vmatpush.msra.mxu0 %v1390_v33  ;;  %v1394_v23 = vld [vmem:[#allocation2 + $0xc8] sm:$0xff] }
 0x303   :  { %939 = vmatpush.msrb.mxu2 %v2052_v47 }
 0x304   :  { %1007 = vmatpush.msra.mxu3 %v2055_v24  ;;  %1027 = vmatpush.msra.mxu0 %v1391_v19  ;;  %v1395_v24 = vld [vmem:[#allocation2 + $0xb0] sm:$0xff] }
 0x305   :  { %940 = vmatpush.msrb.mxu2 %v2059_v48 }
 0x306   :  { %1008 = vmatpush.msra.mxu3 %v2062_v25  ;;  %1028 = vmatpush.msra.mxu0 %v1392_v21  ;;  %v1396_v25 = vld [vmem:[#allocation2 + $0x98] sm:$0xff] }
 0x307   :  { %941 = vmatpush.msrb.mxu2 %v2066_v49 }
 0x308   :  { %1009 = vmatpush.msra.mxu3 %v2069_v26  ;;  %1029 = vmatpush.msra.mxu0 %v1393_v22  ;;  %v1397_v26 = vld [vmem:[#allocation2 + $0x80] sm:$0xff] }
 0x309   :  { %942 = vmatpush.msrb.mxu2 %v2073_v51 }
 0x30a   :  { %1010 = vmatpush.msra.mxu3 %v2076_v27  ;;  %1030 = vmatpush.msra.mxu0 %v1394_v23  ;;  %v1398_v27 = vld [vmem:[#allocation2 + $0x68] sm:$0xff] }
 0x30b   :  { %943 = vmatpush.msrb.mxu2 %v2080_v52 }
 0x30c   :  { %1011 = vmatpush.msra.mxu3 %v2083_v28  ;;  %1031 = vmatpush.msra.mxu0 %v1395_v24  ;;  %v1399_v28 = vld [vmem:[#allocation2 + $0x50] sm:$0xff] }
 0x30d   :  { %944 = vmatpush.msrb.mxu2 %v2087_v53 }
 0x30e   :  { %1012 = vmatpush.msra.mxu3 %v2090_v30  ;;  %1032 = vmatpush.msra.mxu0 %v1396_v25  ;;  %v1400_v30 = vld [vmem:[#allocation2 + $0x38] sm:$0xff] }
 0x30f   :  { %945 = vmatpush.msrb.mxu2 %v2094_v54 }
 0x310   :  { %1013 = vmatpush.msra.mxu3 %v2097_v32  ;;  %1033 = vmatpush.msra.mxu0 %v1397_v26  ;;  %v2307_v32 = vld [vmem:[#allocation30_spill] sm:$0xff] }
 0x311   :  { %946 = vmatpush.msrb.mxu2 %v2101_v56  ;;  %v193_v34 = vadd.f32 %v2307_v32, %v2300_v14 }
 0x312   :  { %1014 = vmatpush.msra.mxu3 %v2104_v35  ;;  %1034 = vmatpush.msra.mxu0 %v1398_v27  ;;  %v2308_v35 = vld [vmem:[#allocation21_spill] sm:$0xff] }
 0x313   :  { %947 = vmatpush.msrb.mxu2 %v2108_v57 }
 0x314   :  { %1015 = vmatpush.msra.mxu3 %v2111_v38  ;;  %1035 = vmatpush.msra.mxu0 %v1399_v28 }
 0x315   :  { %948 = vmatpush.msrb.mxu2 %v2115_v1 }
 0x316   :  { %1016 = vmatpush.msra.mxu3 %v2118_v58  ;;  %1036 = vmatpush.msra.mxu0 %v1400_v30 }
 0x374   :  { %v734_v46 = vpop.f32.mrf.mxu0 }
 0x375   :  { %v777_v20 = vadd.f32 %v734_v46, %v1857_v0 }
 0x379   :  { %v694_v60 = vpop.f32.mrf.mxu2  ;;  %v714_v55 = vpop.f32.mrf.mxu3 }
 0x37a   :  { %v737_v4 = vadd.f32 %v694_v60, %v2308_v35  ;;  %v757_v3 = vadd.f32 %v714_v55, %v193_v34 }
 0x37c   :  { %v1255_v5 = vmul.f32 -1.442695, %v737_v4  ;;  %v1256_v7 = vmul.f32 -1.442695, %v757_v3 }
 0x37e   :  { %1309 = vpow2.f32 %v1255_v5 }
 0x37f   :  { %1311 = vpow2.f32 %v1256_v7 }
 0x384   :  { %v1310_v38 = vpop.eup %1309 }
 0x385   :  { %v1312_v8 = vpop.eup %1311  ;;  %v741_v10 = vadd.f32 1.0, %v1310_v38 }
 0x386   :  { %v761_v6 = vadd.f32 1.0, %v1312_v8  ;;  %v2312_v8 = vld [vmem:[#allocation33_spill] sm:$0xff] }
 0x387   :  { %1313 = vrcp.f32 %v741_v10  ;;  %v753_v43 = vand.u32 2147483648, %v741_v10  ;;  %v751_v12 = vand.u32 2147483647, %v741_v10  ;;  %vm747_vm2 = vweird.f32 %v741_v10 }
 0x388   :  { %1315 = vrcp.f32 %v761_v6  ;;  %v773_v16 = vand.u32 2147483648, %v761_v6  ;;  %vm767_vm6 = vweird.f32 %v761_v6  ;;  %v771_v19 = vand.u32 2147483647, %v761_v6 }
 0x389   :  { %v754_v13 = vor.u32 1.1754944e-38, %v753_v43  ;;  %vm752_vm4 = vcmp.eq.f32.partialorder %v751_v12, 8.507059e+37 }
 0x38a   :  { %v774_v23 = vor.u32 1.1754944e-38, %v773_v16  ;;  %vm772_vm8 = vcmp.eq.f32.partialorder %v771_v19, 8.507059e+37 }
 0x38d   :  { %v1314_v58 = vpop.eup %1313 }
 0x38e   :  { %v1316_v44 = vpop.eup %1315  ;;  %v743_v50 = vmul.f32 %v1314_v58, %v741_v10  ;;  %vm748_vm1 = vweird.f32 %v1314_v58  ;;  %v237_v10 = vadd.f32 %v2312_v8, %v1860_v41  ;;  %v1124_v8 = vld [vmem:[#allocation2 + $0x330] sm:$0xff] }
 0x38f   :  { %v763_v39 = vmul.f32 %v1316_v44, %v761_v6  ;;  %vm749_vm3 = vmor %vm747_vm2, %vm748_vm1  ;;  %vm768_vm5 = vweird.f32 %v1316_v44 }
 0x390   :  { %v744_v2 = vsub.f32 1.0, %v743_v50  ;;  %vm769_vm7 = vmor %vm767_vm6, %vm768_vm5 }
 0x391   :  { %v764_v61 = vsub.f32 1.0, %v763_v39 }
 0x392   :  { %v745_v9 = vmul.f32 %v1314_v58, %v744_v2 }
 0x393   :  { %v765_v37 = vmul.f32 %v1316_v44, %v764_v61 }
 0x394   :  { %v746_v63 = vadd.f32 %v1314_v58, %v745_v9 }
 0x395   :  { %v766_v62 = vadd.f32 %v1316_v44, %v765_v37 }
 0x396   :  { %v750_v59 = vsel %vm749_vm3, %v1314_v58, %v746_v63 }
 0x397   :  { %v755_v29 = vsel %vm752_vm4, %v754_v13, %v750_v59  ;;  %v770_v22 = vsel %vm769_vm7, %v1316_v44, %v766_v62  ;;  %v2313_v59 = vld [vmem:[#allocation34_spill] sm:$0xff] }
 0x398   :  { %v778_v33 = vmul.f32 %v777_v20, %v755_v29  ;;  %v775_v24 = vsel %vm772_vm8, %v774_v23, %v770_v22  ;;  %v199_v29 = vadd.f32 %v2313_v59, %v2300_v14 }
 0x399   :  { %v781_v25 = vsub.f32 1.0, %v775_v24  ;;  %v783_v28 = vmul.f32 %v775_v24, %v2129_v31 }
 0x39a   :  { %v779_v21 = vadd.f32 %v778_v33, %v234_v42  ;;  %v2314_v42 = vld [vmem:[#allocation23_spill] sm:$0xff] }
 0x39c   :  { %1317 = vtanh.f32 %v779_v21 }
 0x3a2   :  { %v1318_v26 = vpop.eup %1317 }
 0x3a3   :  { %v782_v27 = vmul.f32 %v1318_v26, %v781_v25 }
 0x3a5   :  { %v2173_v30 = vadd.f32 %v783_v28, %v782_v27 }
 0x3a7   :  { %801 = vmatmul.f32.vlgmr.msra.gmra.mxu1 %v2173_v30  ;;  %821 = vmatmul.f32.vlgmr.msra.gmra.mxu2 %v2173_v30 }
 0x3a8   :  { %841 = vmatmul.f32.vlgmr.msrb.gmra.mxu3 %v2173_v30  ;;  %1041 = vmatpush.msra.mxu1 %v2010_v15 }
 0x3a9   :  { %1142 = vmatpush.msra.mxu2 %v1124_v8  ;;  %v1130_v8 = vld [vmem:[#allocation2 + $0x3c0] sm:$0xff] }
 0x3aa   :  { %1042 = vmatpush.msra.mxu1 %v2017_v17  ;;  %v2310_v17 = vld [vmem:[#allocation22_spill] sm:$0xff] }
 0x3ac   :  { %1043 = vmatpush.msra.mxu1 %v2024_v18 }
 0x3ae   :  { %1044 = vmatpush.msra.mxu1 %v2031_v36 }
 0x3b0   :  { %1045 = vmatpush.msra.mxu1 %v2038_v40  ;;  %v2311_v40 = vld [vmem:[#allocation32_spill] sm:$0xff] }
 0x3b2   :  { %1046 = vmatpush.msra.mxu1 %v2045_v45  ;;  %v196_v45 = vadd.f32 %v2311_v40, %v2300_v14 }
 0x3b4   :  { %1047 = vmatpush.msra.mxu1 %v2052_v47 }
 0x3b6   :  { %1048 = vmatpush.msra.mxu1 %v2059_v48 }
 0x3b8   :  { %1049 = vmatpush.msra.mxu1 %v2066_v49 }
 0x3ba   :  { %1050 = vmatpush.msra.mxu1 %v2073_v51 }
 0x3bc   :  { %1051 = vmatpush.msra.mxu1 %v2080_v52 }
 0x3be   :  { %1052 = vmatpush.msra.mxu1 %v2087_v53 }
 0x3c0   :  { %1053 = vmatpush.msra.mxu1 %v2094_v54 }
 0x3c2   :  { %1054 = vmatpush.msra.mxu1 %v2101_v56 }
 0x3c4   :  { %1055 = vmatpush.msra.mxu1 %v2108_v57 }
 0x3c6   :  { %1056 = vmatpush.msra.mxu1 %v2115_v1 }
 0x424   :  { %v802_v15 = vpop.f32.mrf.mxu1 }
 0x425   :  { %v845_v18 = vadd.f32 %v802_v15, %v2310_v17 }
 0x427   :  { %v1257_v36 = vmul.f32 -1.442695, %v845_v18 }
 0x429   :  { %1319 = vpow2.f32 %v1257_v36 }
 0x42a   :  { %v822_v47 = vpop.f32.mrf.mxu2 }
 0x42b   :  { %v865_v48 = vadd.f32 %v822_v47, %v196_v45  ;;  %v842_v55 = vpop.f32.mrf.mxu3 }
 0x42c   :  { %v885_v38 = vadd.f32 %v842_v55, %v1857_v0 }
 0x42d   :  { %v1258_v49 = vmul.f32 -1.442695, %v865_v48 }
 0x42f   :  { %v1320_v51 = vpop.eup %1319  ;;  %1321 = vpow2.f32 %v1258_v49 }
 0x430   :  { %v849_v52 = vadd.f32 1.0, %v1320_v51 }
 0x432   :  { %1323 = vrcp.f32 %v849_v52  ;;  %v861_v31 = vand.u32 2147483648, %v849_v52  ;;  %v859_v34 = vand.u32 2147483647, %v849_v52  ;;  %vm855_vm10 = vweird.f32 %v849_v52 }
 0x434   :  { %v862_v3 = vor.u32 1.1754944e-38, %v861_v31  ;;  %vm860_vm12 = vcmp.eq.f32.partialorder %v859_v34, 8.507059e+37 }
 0x435   :  { %v1322_v53 = vpop.eup %1321 }
 0x436   :  { %v869_v54 = vadd.f32 1.0, %v1322_v53 }
 0x438   :  { %v1324_v56 = vpop.eup %1323  ;;  %1325 = vrcp.f32 %v869_v54  ;;  %v881_v50 = vand.u32 2147483648, %v869_v54  ;;  %v879_v39 = vand.u32 2147483647, %v869_v54  ;;  %vm875_vm14 = vweird.f32 %v869_v54 }
 0x439   :  { %v851_v57 = vmul.f32 %v1324_v56, %v849_v52  ;;  %vm856_vm9 = vweird.f32 %v1324_v56 }
 0x43a   :  { %vm857_vm11 = vmor %vm855_vm10, %vm856_vm9  ;;  %v882_v9 = vor.u32 1.1754944e-38, %v881_v50  ;;  %vm880_vm0 = vcmp.eq.f32.partialorder %v879_v39, 8.507059e+37  ;;  %v2316_v50 = vld [vmem:[#allocation36_spill] sm:$0xff] }
 0x43b   :  { %v852_v1 = vsub.f32 1.0, %v851_v57  ;;  %v202_v39 = vadd.f32 %v2316_v50, %v2300_v14  ;;  %v1113_v14 = vld [vmem:[#allocation2 + $0x228] sm:$0xff] }
 0x43d   :  { %v853_v32 = vmul.f32 %v1324_v56, %v852_v1 }
 0x43e   :  { %v1326_v60 = vpop.eup %1325 }
 0x43f   :  { %v871_v35 = vmul.f32 %v1326_v60, %v869_v54  ;;  %v854_v4 = vadd.f32 %v1324_v56, %v853_v32  ;;  %vm876_vm13 = vweird.f32 %v1326_v60 }
 0x440   :  { %vm877_vm15 = vmor %vm875_vm14, %vm876_vm13 }
 0x441   :  { %v872_v5 = vsub.f32 1.0, %v871_v35  ;;  %v858_v7 = vsel %vm857_vm11, %v1324_v56, %v854_v4  ;;  %v2315_v56 = vld [vmem:[#allocation35_spill] sm:$0xff] }
 0x442   :  { %v863_v6 = vsel %vm860_vm12, %v862_v3, %v858_v7  ;;  %v240_v57 = vadd.f32 %v2315_v56, %v1860_v41 }
 0x443   :  { %v873_v58 = vmul.f32 %v1326_v60, %v872_v5  ;;  %v886_v44 = vmul.f32 %v885_v38, %v863_v6  ;;  %v1122_v6 = vld [vmem:[#allocation2 + $0x300] sm:$0xff] }
 0x445   :  { %v887_v2 = vadd.f32 %v886_v44, %v237_v10  ;;  %v874_v43 = vadd.f32 %v1326_v60, %v873_v58  ;;  %v1123_v10 = vld [vmem:[#allocation2 + $0x318] sm:$0xff]  ;;  %v1121_v58 = vld [vmem:[#allocation2 + $0x2e8] sm:$0xff]  ;;  %v1120_v44 = vld [vmem:[#allocation2 + $0x2d0] sm:$0xff] }
 0x446   :  { %1143 = vmatpush.msra.mxu2 %v1123_v10 }
 0x447   :  { %1327 = vtanh.f32 %v887_v2  ;;  %v878_v61 = vsel %vm877_vm15, %v1326_v60, %v874_v43  ;;  %v1119_v2 = vld [vmem:[#allocation2 + $0x2b8] sm:$0xff] }
 0x448   :  { %v883_v12 = vsel %vm880_vm0, %v882_v9, %v878_v61  ;;  %1144 = vmatpush.msra.mxu2 %v1122_v6  ;;  %v1118_v9 = vld [vmem:[#allocation2 + $0x2a0] sm:$0xff]  ;;  %v1129_v6 = vld [vmem:[#allocation2 + $0x3a8] sm:$0xff] }
 0x449   :  { %v889_v46 = vsub.f32 1.0, %v883_v12  ;;  %v891_v13 = vmul.f32 %v883_v12, %v2173_v30 }
 0x44a   :  { %1145 = vmatpush.msra.mxu2 %v1121_v58 }
 0x44c   :  { %1146 = vmatpush.msra.mxu2 %v1120_v44  ;;  %v1128_v44 = vld [vmem:[#allocation2 + $0x390] sm:$0xff] }
 0x44d   :  { %v1328_v37 = vpop.eup %1327 }
 0x44e   :  { %v890_v63 = vmul.f32 %v1328_v37, %v889_v46  ;;  %1147 = vmatpush.msra.mxu2 %v1119_v2  ;;  %v1117_v46 = vld [vmem:[#allocation2 + $0x288] sm:$0xff]  ;;  %v1116_v37 = vld [vmem:[#allocation2 + $0x270] sm:$0xff] }
 0x450   :  { %v892_v20 = vadd.f32 %v891_v13, %v890_v63  ;;  %1148 = vmatpush.msra.mxu2 %v1118_v9  ;;  %v1115_v63 = vld [vmem:[#allocation2 + $0x258] sm:$0xff] }
 0x451   :  { %v1127_v9 = vld [vmem:[#allocation2 + $0x378] sm:$0xff] }
 0x452   :  { %909 = vmatmul.f32.vlgmr.msrb.gmra.mxu0 %v892_v20  ;;  %929 = vmatmul.f32.vlgmr.msrb.gmra.mxu1 %v892_v20 }
 0x453   :  { %949 = vmatmul.f32.vlgmr.msrb.gmra.mxu2 %v892_v20 }
 0x454   :  { %1149 = vmatpush.msra.mxu2 %v1117_v46  ;;  %v1125_v46 = vld [vmem:[#allocation2 + $0x348] sm:$0xff] }
 0x456   :  { %1150 = vmatpush.msra.mxu2 %v1116_v37  ;;  %v1401_v37 = vld [vmem:[#allocation2 + $0x1b0] sm:$0xff] }
 0x458   :  { %1151 = vmatpush.msra.mxu2 %v1115_v63  ;;  %v1141_v63 = vperm.slane %v1401_v37, 2 }
 0x4cf   :  { %v910_v62 = vpop.f32.mrf.mxu0  ;;  %v930_v11 = vpop.f32.mrf.mxu1 }
 0x4d0   :  { %v953_v16 = vadd.f32 %v910_v62, %v2314_v42  ;;  %v973_v33 = vadd.f32 %v930_v11, %v199_v29  ;;  %v1114_v29 = vld [vmem:[#allocation2 + $0x240] sm:$0xff]  ;;  %v1112_v42 = vld [vmem:[#allocation2 + $0x210] sm:$0xff] }
 0x4d1   :  { %1152 = vmatpush.msra.mxu2 %v1114_v29  ;;  %v1183_v29 = vperm.slane %v1401_v37, 3 }
 0x4d2   :  { %v1259_v19 = vmul.f32 -1.442695, %v953_v16  ;;  %v1260_v21 = vmul.f32 -1.442695, %v973_v33  ;;  %v1111_v33 = vld [vmem:[#allocation2 + $0x1f8] sm:$0xff] }
 0x4d3   :  { %1153 = vmatpush.msra.mxu2 %v1113_v14 }
 0x4d4   :  { %1329 = vpow2.f32 %v1259_v19  ;;  %v1110_v19 = vld [vmem:[#allocation2 + $0x1e0] sm:$0xff] }
 0x4d5   :  { %1331 = vpow2.f32 %v1260_v21  ;;  %1154 = vmatpush.msra.mxu2 %v1112_v42 }
 0x4d6   :  { %v950_v47 = vpop.f32.mrf.mxu2 }
 0x4d7   :  { %v993_v52 = vadd.f32 %v950_v47, %v1857_v0  ;;  %1155 = vmatpush.msra.mxu2 %v1111_v33 }
 0x4d9   :  { %1156 = vmatpush.msra.mxu2 %v1110_v19 }
 0x4da   :  { %v1330_v22 = vpop.eup %1329 }
 0x4db   :  { %v1332_v23 = vpop.eup %1331  ;;  %v957_v24 = vadd.f32 1.0, %v1330_v22  ;;  %v1109_v22 = vld [vmem:[#allocation2 + $0x1c8] sm:$0xff] }
 0x4dc   :  { %v977_v25 = vadd.f32 1.0, %v1332_v23  ;;  %1157 = vmatpush.msra.mxu2 %v1109_v22 }
 0x4dd   :  { %1333 = vrcp.f32 %v957_v24  ;;  %v969_v18 = vand.u32 2147483648, %v957_v24  ;;  %v967_v40 = vand.u32 2147483647, %v957_v24  ;;  %vm963_vm2 = vweird.f32 %v957_v24 }
 0x4de   :  { %1335 = vrcp.f32 %v977_v25  ;;  %v989_v31 = vand.u32 2147483648, %v977_v25  ;;  %vm983_vm6 = vweird.f32 %v977_v25  ;;  %v987_v32 = vand.u32 2147483647, %v977_v25 }
 0x4df   :  { %v970_v49 = vor.u32 1.1754944e-38, %v969_v18  ;;  %vm968_vm4 = vcmp.eq.f32.partialorder %v967_v40, 8.507059e+37  ;;  %v1135_v40 = vld [vmem:[#allocation2 + $0x438] sm:$0xff] }
 0x4e0   :  { %v990_v55 = vor.u32 1.1754944e-38, %v989_v31  ;;  %vm988_vm8 = vcmp.eq.f32.partialorder %v987_v32, 8.507059e+37 }
 0x4e3   :  { %v1334_v26 = vpop.eup %1333 }
 0x4e4   :  { %v1336_v27 = vpop.eup %1335  ;;  %v959_v28 = vmul.f32 %v1334_v26, %v957_v24  ;;  %vm964_vm1 = vweird.f32 %v1334_v26  ;;  %v1140_v24 = vld [vmem:[#allocation2 + $0x4b0] sm:$0xff] }
 0x4e5   :  { %v979_v30 = vmul.f32 %v1336_v27, %v977_v25  ;;  %vm965_vm3 = vmor %vm963_vm2, %vm964_vm1  ;;  %vm984_vm5 = vweird.f32 %v1336_v27  ;;  %v1139_v25 = vld [vmem:[#allocation2 + $0x498] sm:$0xff]  ;;  %1163 = vmatpush.msrb.mxu3 %v1140_v24 }
 0x4e6   :  { %v960_v15 = vsub.f32 1.0, %v959_v28  ;;  %vm985_vm7 = vmor %vm983_vm6, %vm984_vm5 }
 0x4e7   :  { %v980_v17 = vsub.f32 1.0, %v979_v30  ;;  %1164 = vmatpush.msrb.mxu3 %v1139_v25  ;;  %v1137_v30 = vld [vmem:[#allocation2 + $0x468] sm:$0xff] }
 0x4e8   :  { %v961_v36 = vmul.f32 %v1334_v26, %v960_v15 }
 0x4e9   :  { %v981_v45 = vmul.f32 %v1336_v27, %v980_v17  ;;  %v1136_v17 = vld [vmem:[#allocation2 + $0x450] sm:$0xff] }
 0x4ea   :  { %v962_v48 = vadd.f32 %v1334_v26, %v961_v36 }
 0x4eb   :  { %v982_v54 = vadd.f32 %v1336_v27, %v981_v45 }
 0x4ec   :  { %v966_v51 = vsel %vm965_vm3, %v1334_v26, %v962_v48  ;;  %v1134_v48 = vld [vmem:[#allocation2 + $0x420] sm:$0xff] }
 0x4ed   :  { %v971_v53 = vsel %vm968_vm4, %v970_v49, %v966_v51  ;;  %v986_v60 = vsel %vm985_vm7, %v1336_v27, %v982_v54  ;;  %v1138_v27 = vld [vmem:[#allocation2 + $0x480] sm:$0xff]  ;;  %v1133_v54 = vld [vmem:[#allocation2 + $0x408] sm:$0xff]  ;;  %vm1204_vm4 = vcmask 9216  }
 0x4ee   :  { %v994_v1 = vmul.f32 %v993_v52, %v971_v53  ;;  %v991_v35 = vsel %vm988_vm8, %v990_v55, %v986_v60  ;;  %1165 = vmatpush.msrb.mxu3 %v1138_v27  ;;  %v1131_v55 = vld [vmem:[#allocation2 + $0x3d8] sm:$0xff] }
 0x4ef   :  { %v997_v4 = vsub.f32 1.0, %v991_v35  ;;  %v999_v7 = vmul.f32 %v991_v35, %v892_v20  ;;  %v2317_v20 = vld [vmem:[#allocation24_spill] sm:$0xff]  ;;  %v2318_v35 = vld [vmem:[#allocation37_spill] sm:$0xff] }
 0x4f0   :  { %v995_v34 = vadd.f32 %v994_v1, %v240_v57  ;;  %1166 = vmatpush.msrb.mxu3 %v1137_v30  ;;  %v1132_v1 = vld [vmem:[#allocation2 + $0x3f0] sm:$0xff] }
 0x4f2   :  { %1337 = vtanh.f32 %v995_v34  ;;  %1167 = vmatpush.msrb.mxu3 %v1136_v17 }
 0x4f4   :  { %1168 = vmatpush.msrb.mxu3 %v1135_v40 }
 0x4f6   :  { %1169 = vmatpush.msrb.mxu3 %v1134_v48 }
 0x4f8   :  { %v1338_v3 = vpop.eup %1337  ;;  %1170 = vmatpush.msrb.mxu3 %v1133_v54 }
 0x4f9   :  { %v998_v5 = vmul.f32 %v1338_v3, %v997_v4  ;;  %v243_v4 = vadd.f32 %v2318_v35, %v1860_v41 }
 0x4fa   :  { %1171 = vmatpush.msrb.mxu3 %v1132_v1 }
 0x4fb   :  { %v2207_v38 = vadd.f32 %v999_v7, %v998_v5 }
 0x4fc   :  { %1172 = vmatpush.msrb.mxu3 %v1131_v55 }
 0x4fd   :  { %1017 = vmatmul.f32.vlgmr.msra.gmra.mxu3 %v2207_v38  ;;  %1037 = vmatmul.f32.vlgmr.msra.gmra.mxu0 %v2207_v38 }
 0x4fe   :  { %1057 = vmatmul.f32.vlgmr.msra.gmra.mxu1 %v2207_v38  ;;  %1173 = vmatpush.msrb.mxu3 %v1130_v8 }
 0x500   :  { %1174 = vmatpush.msrb.mxu3 %v1129_v6 }
 0x502   :  { %1175 = vmatpush.msrb.mxu3 %v1128_v44 }
 0x504   :  { %1176 = vmatpush.msrb.mxu3 %v1127_v9 }
 0x57a   :  { %v1038_v43 = vpop.f32.mrf.mxu0 }
 0x57b   :  { %v1081_v61 = vadd.f32 %v1038_v43, %v202_v39  ;;  %v1058_v53 = vpop.f32.mrf.mxu1 }
 0x57c   :  { %v1101_v31 = vadd.f32 %v1058_v53, %v1857_v0 }
 0x57d   :  { %v1262_v12 = vmul.f32 -1.442695, %v1081_v61 }
 0x57f   :  { %1339 = vpow2.f32 %v1262_v12  ;;  %v1126_v12 = vld [vmem:[#allocation2 + $0x360] sm:$0xff] }
 0x580   :  { %v1018_v13 = vpop.f32.mrf.mxu3  ;;  %1177 = vmatpush.msrb.mxu3 %v1126_v12 }
 0x581   :  { %v1061_v59 = vadd.f32 %v1018_v13, %v2317_v20 }
 0x582   :  { %1178 = vmatpush.msrb.mxu3 %v1125_v46 }
 0x583   :  { %v1261_v62 = vmul.f32 -1.442695, %v1061_v59 }
 0x585   :  { %v1340_v11 = vpop.eup %1339  ;;  %1341 = vpow2.f32 %v1261_v62 }
 0x586   :  { %v2215_v16 = vadd.f32 1.0, %v1340_v11 }
 0x588   :  { %1343 = vrcp.f32 %v2215_v16  ;;  %v1097_v3 = vand.u32 2147483648, %v2215_v16  ;;  %vm1091_vm14 = vweird.f32 %v2215_v16  ;;  %v1095_v7 = vand.u32 2147483647, %v2215_v16 }
 0x58a   :  { %v1098_v58 = vor.u32 1.1754944e-38, %v1097_v3  ;;  %vm1096_vm0 = vcmp.eq.f32.partialorder %v1095_v7, 8.507059e+37 }
 0x58b   :  { %v1342_v21 = vpop.eup %1341 }
 0x58c   :  { %v1065_v23 = vadd.f32 1.0, %v1342_v21 }
 0x58e   :  { %1345 = vrcp.f32 %v1065_v23  ;;  %v1344_v26 = vpop.eup %1343  ;;  %v1077_v47 = vand.u32 2147483648, %v1065_v23  ;;  %v1075_v51 = vand.u32 2147483647, %v1065_v23  ;;  %vm1071_vm10 = vweird.f32 %v1065_v23 }
 0x58f   :  { %v1087_v28 = vmul.f32 %v1344_v26, %v2215_v16  ;;  %vm1092_vm13 = vweird.f32 %v1344_v26 }
 0x590   :  { %v1078_v57 = vor.u32 1.1754944e-38, %v1077_v47  ;;  %vm1076_vm12 = vcmp.eq.f32.partialorder %v1075_v51, 8.507059e+37  ;;  %vm1093_vm15 = vmor %vm1091_vm14, %vm1092_vm13 }
 0x591   :  { %v1088_v36 = vsub.f32 1.0, %v1087_v28 }
 0x593   :  { %v1089_v52 = vmul.f32 %v1344_v26, %v1088_v36 }
 0x594   :  { %v1346_v15 = vpop.eup %1345 }
 0x595   :  { %v1067_v18 = vmul.f32 %v1346_v15, %v1065_v23  ;;  %vm1072_vm9 = vweird.f32 %v1346_v15  ;;  %v1090_v60 = vadd.f32 %v1344_v26, %v1089_v52 }
 0x596   :  { %vm1073_vm11 = vmor %vm1071_vm10, %vm1072_vm9 }
 0x597   :  { %v1068_v45 = vsub.f32 1.0, %v1067_v18  ;;  %v1094_v10 = vsel %vm1093_vm15, %v1344_v26, %v1090_v60 }
 0x598   :  { %v1099_v41 = vsel %vm1096_vm0, %v1098_v58, %v1094_v10 }
 0x599   :  { %v1069_v49 = vmul.f32 %v1346_v15, %v1068_v45  ;;  %v1105_v50 = vsub.f32 1.0, %v1099_v41  ;;  %v1107_v43 = vmul.f32 %v1099_v41, %v2207_v38 }
 0x59b   :  { %v1070_v56 = vadd.f32 %v1346_v15, %v1069_v49 }
 0x59d   :  { %v1074_v32 = vsel %vm1073_vm11, %v1346_v15, %v1070_v56 }
 0x59e   :  { %v1079_v34 = vsel %vm1076_vm12, %v1078_v57, %v1074_v32 }
 0x59f   :  { %v1102_v5 = vmul.f32 %v1101_v31, %v1079_v34 }
 0x5a1   :  { %v1103_v0 = vadd.f32 %v1102_v5, %v243_v4 }
 0x5a3   :  { %1347 = vtanh.f32 %v1103_v0 }
 0x5a9   :  { %v1348_v39 = vpop.eup %1347 }
 0x5aa   :  { %v1106_v2 = vmul.f32 %v1348_v39, %v1105_v50 }
 0x5ac   :  { %v1108_v61 = vadd.f32 %v1107_v43, %v1106_v2 }
 0x5ae   :  { %1158 = vmatmul.f32.vlgmr.msra.gmra.mxu2 %v1108_v61 }
 0x631   :  { %v1159_v13 = vpop.f32.mrf.mxu2 }
 0x632   :  { %v1160_v20 = vadd.f32 %v1159_v13, %v1141_v63 }
 0x634   :  { %v1162_v59 = vmax.f32 %v1160_v20, 0.0 }
 0x636   :  { %1179 = vmatmul.f32.vlgmr.msrb.gmra.mxu3 %v1162_v59 }
 0x6b9   :  { %v1180_v62 = vpop.f32.mrf.mxu3 }
 0x6ba   :  { %v1184_v14 = vadd.f32 %v1183_v29, %v1180_v62 }
 0x6bc   :  { %v1263_v11 = vmul.f32 -1.442695, %v1184_v14 }
 0x6be   :  { %1349 = vpow2.f32 %v1263_v11 }
 0x6c4   :  { %v1350_v38 = vpop.eup %1349 }
 0x6c5   :  { %v1188_v42 = vadd.f32 1.0, %v1350_v38 }
 0x6c7   :  { %1351 = vrcp.f32 %v1188_v42  ;;  %v1200_v21 = vand.u32 2147483648, %v1188_v42  ;;  %v1198_v23 = vand.u32 2147483647, %v1188_v42  ;;  %vm1194_vm2 = vweird.f32 %v1188_v42 }
 0x6c9   :  { %v1201_v25 = vor.u32 1.1754944e-38, %v1200_v21  ;;  %vm1199_vm5 = vcmp.eq.f32.partialorder %v1198_v23, 8.507059e+37 }
 0x6cd   :  { %v1352_v16 = vpop.eup %1351 }
 0x6ce   :  { %v1190_v33 = vmul.f32 %v1352_v16, %v1188_v42  ;;  %vm1195_vm1 = vweird.f32 %v1352_v16 }
 0x6cf   :  { %vm1196_vm3 = vmor %vm1194_vm2, %vm1195_vm1 }
 0x6d0   :  { %v1191_v19 = vsub.f32 1.0, %v1190_v33 }
 0x6d2   :  { %v1192_v22 = vmul.f32 %v1352_v16, %v1191_v19 }
 0x6d4   :  { %v1193_v24 = vadd.f32 %v1352_v16, %v1192_v22 }
 0x6d6   :  { %v1197_v26 = vsel %vm1196_vm3, %v1352_v16, %v1193_v24 }
 0x6d7   :  { %v1202_v27 = vsel %vm1199_vm5, %v1201_v25, %v1197_v26 }
 0x6d8   :  { %1205 = vst.msk [vmem:[#allocation5] sm:$0x3] %vm1204_vm4, %v1202_v27 }
 0x6d9   :  { %1216 = dma.vmem_to_hbm [thread:$0]  %s1212_s3, 32, %s1214_s6, [#allocation4]  }
 0x6da   :  { %1452 = dma.done.wait [#allocation4], 32  }
 0x6db   :  { %1453 = vsyncadd [#allocation4], 4294967264 }
 0x6dc   :  { %1221 = vsyncpa [#allocation3], 1 }
 0x6dd   :  { %1222 = vsyncpa [#allocation4], 1 }

</bundles_post_ra>
